<compile_context>
chip_gen: v6e
topology: v6e:2x2x1
jax: 0.10.0
libtpu: 0.0.40
codegen_flags: <defaults>
</compile_context>

<pallas_src>
import functools
import math

import jax
import jax.numpy as jnp
from jax import lax
from jax.experimental import pallas as pl
from jax.experimental.pallas import tpu as pltpu


def _round_up(x, m):
    return (x + m - 1) // m * m


def _moe_gate_kernel(x_ref, w_ref, idx_ref, wt_ref, *,
                     top_k, n_experts, norm_topk, scaling):
    """x_ref: (tm, H) token tile; w_ref: (H, E_pad) resident gate weight.

    idx_ref: (tm, top_k) int32 expert ids (descending-score order);
    wt_ref:  (tm, top_k) f32 routing weights.
    """
    # Native-dtype MXU matmul (bf16 stays bf16), f32 accumulation.
    logits = jnp.dot(x_ref[...], w_ref[...],
                     preferred_element_type=jnp.float32)          # (tm, E_pad)
    n_rows, e_pad = logits.shape
    ids = lax.broadcasted_iota(jnp.int32, (n_rows, e_pad), 1)
    neg_inf = jnp.float32(-jnp.inf)

    # Experts padded up to the lane width never win the top-k.
    if e_pad != n_experts:
        logits = jnp.where(ids < n_experts, logits, neg_inf)

    # Softmax is monotone: select top-k on the raw logits for BOTH paths and
    # only exponentiate the selected values.
    #   norm_topk: softmax over the selected logits (== softmax + renormalize)
    #   else:      exp(sel - m0) / sum(exp(logits - m0)) * scaling
    work = logits
    m0 = None          # row max of the (masked) logits
    denom = None       # non-norm: full-row softmax denominator
    row_denom = None   # norm: sum of exp over the selected logits
    for k in range(top_k):
        vmax = jnp.max(work, axis=-1, keepdims=True)                     # (tm, 1)
        imax = jnp.min(jnp.where(work >= vmax, ids, e_pad),
                       axis=-1, keepdims=True)                           # (tm, 1)
        if k == 0:
            m0 = vmax
            if not norm_topk:
                denom = jnp.sum(jnp.exp(logits - m0), axis=-1, keepdims=True)
        p = jnp.exp(vmax - m0)                                           # (tm, 1)
        # Write each pick straight into its output column (no narrow concat).
        idx_ref[:, k:k + 1] = imax
        wt_ref[:, k:k + 1] = p
        if norm_topk:
            row_denom = p if k == 0 else row_denom + p
        if k + 1 < top_k:
            work = jnp.where(ids == imax, neg_inf, work)

    # Final normalization touches only the narrow (tm, top_k) tile.
    if norm_topk:
        wt_ref[...] = wt_ref[...] / row_denom
    else:
        wt_ref[...] = wt_ref[...] * (scaling / denom)


def prepare_gate_weight(weight, compute_dtype=jnp.bfloat16):
    """One-time (parameter-load time) prep of the PyTorch-layout (E, H) weight.

    Transposes to (H, E), casts to the kernel compute dtype, pads the expert
    axis to a multiple of 128 lanes (full unmasked MXU output / selection
    tiles).  Returns (w_t_padded, n_experts)."""
    E, H = weight.shape
    w_t = jnp.asarray(weight).T
    if compute_dtype is not None:
        w_t = w_t.astype(compute_dtype)
    e_pad = _round_up(E, 128)
    if e_pad != E:
        w_t = jnp.pad(w_t, ((0, 0), (0, e_pad - E)))
    return w_t, E


def moe_gate(hidden_states, weight, *, top_k, norm_topk_prob=True,
             routed_scaling_factor=1.0, tm=512, compute_dtype=jnp.bfloat16):
    """Matches MoEGate.forward (topk_method='greedy').

    `weight` is either the raw PyTorch-layout (E, H) gate weight, or the tuple
    returned by prepare_gate_weight (preferred: prepare once at load time).
    Returns (topk_idx, topk_weight, None), each (B*S, top_k)."""
    if isinstance(weight, tuple):
        w_t, n_experts = weight
    else:
        # Per-call fallback; hoist to parameter-load time in production.
        w_t, n_experts = prepare_gate_weight(weight, compute_dtype=compute_dtype)

    B, S, H = hidden_states.shape
    Hw, e_pad = w_t.shape
    assert H == Hw, "hidden size mismatch between activations and gate weight"
    assert top_k <= n_experts
    N = B * S

    # bf16 operands halve the dominant HBM stream; accumulation stays f32.
    x = hidden_states.reshape(N, H).astype(w_t.dtype)

    # Adaptive token tile: keep >= 2 grid blocks when possible (v7x has two
    # TensorCores; 'parallel' only helps with >= 2 blocks) without over-padding
    # small/decode batches.  tm only needs sublane (8) alignment.
    tm_eff = max(8, min(tm, _round_up(pl.cdiv(N, 2), 8)))
    n_blocks = pl.cdiv(N, tm_eff)
    n_pad = n_blocks * tm_eff
    if n_pad != N:
        # Padded all-zero rows produce valid-looking expert ids; sliced off below.
        x = jnp.pad(x, ((0, n_pad - N), (0, 0)))

    norm = bool(norm_topk_prob and top_k > 1)
    kernel = functools.partial(_moe_gate_kernel, top_k=top_k,
                               n_experts=n_experts, norm_topk=norm,
                               scaling=float(routed_scaling_factor))

    itemsize = jnp.dtype(w_t.dtype).itemsize
    cost = pl.CostEstimate(
        flops=2 * n_pad * H * e_pad,
        transcendentals=n_pad * (top_k if norm else e_pad + top_k),
        bytes_accessed=(n_pad * H * itemsize + H * e_pad * itemsize
                        + n_pad * top_k * 8),
    )

    # Only request extra VMEM when the working set exceeds the 32 MiB scoped
    # default; never hard-code the whole per-core VMEM (64 MiB = all of v7x).
    vmem_need = (2 * tm_eff * H * itemsize        # double-buffered token tiles
                 + 2 * H * e_pad * itemsize       # gate weight (worst case 2 bufs)
                 + 2 * 2 * tm_eff * top_k * 8     # output tiles
                 + 6 * tm_eff * e_pad * 4         # f32 logits/ids/work live values
                 + (4 << 20))                     # headroom
    cp_kwargs = dict(dimension_semantics=("parallel",))
    if vmem_need > (32 << 20):
        cp_kwargs["vmem_limit_bytes"] = int(min(vmem_need, 96 << 20))
    compiler_params = pltpu.CompilerParams(**cp_kwargs)

    out_shape = (jax.ShapeDtypeStruct((n_pad, top_k), jnp.int32),
                 jax.ShapeDtypeStruct((n_pad, top_k), jnp.float32))
    x_spec = pl.BlockSpec((tm_eff, H), lambda i: (i, 0))
    out_specs = [pl.BlockSpec((tm_eff, top_k), lambda i: (i, 0)),
                 pl.BlockSpec((tm_eff, top_k), lambda i: (i, 0))]

    def _run(single_buffer_weight):
        if single_buffer_weight:
            # Grid-invariant weight: one VMEM buffer instead of two.
            w_spec = pl.BlockSpec((H, e_pad), lambda i: (0, 0),
                                  pipeline_mode=pl.Buffered(1))
        else:
            w_spec = pl.BlockSpec((H, e_pad), lambda i: (0, 0))
        return pl.pallas_call(
            kernel,
            out_shape=out_shape,
            grid_spec=pltpu.PrefetchScalarGridSpec(
                num_scalar_prefetch=0,
                grid=(n_blocks,),
                in_specs=[x_spec, w_spec],
                out_specs=out_specs,
            ),
            compiler_params=compiler_params,
            cost_estimate=cost,
        )(x, w_t)

    try:
        topk_idx, topk_wt = _run(True)
    except Exception:
        # pl.Buffered(1) unsupported on this jax/Mosaic version: fall back to
        # the (still correct) default double-buffered weight spec.
        topk_idx, topk_wt = _run(False)

    return topk_idx[:N], topk_wt[:N], None


def _reference(hidden_states, weight, top_k, norm_topk_prob, scaling, compute_dtype):
    B, S, H = hidden_states.shape
    x = hidden_states.reshape(-1, H)
    w = weight
    if compute_dtype is not None:
        x = x.astype(compute_dtype)
        w = w.astype(compute_dtype)
    logits = jnp.dot(x.astype(jnp.float32), w.astype(jnp.float32).T)
    scores = jax.nn.softmax(logits, axis=-1)
    vals, idx = lax.top_k(scores, top_k)
    if norm_topk_prob and top_k > 1:
        vals = vals / (jnp.sum(vals, axis=-1, keepdims=True) + 1e-20)
    else:
        vals = vals * scaling
    return idx, vals


def _check(B, S, H, E, top_k, seed, *, norm=True, scaling=1.0,
           compute_dtype=jnp.bfloat16, atol=1e-5, rtol=1e-5):
    key = jax.random.PRNGKey(seed)
    kx, kw = jax.random.split(key)
    hidden_states = jax.random.normal(kx, (B, S, H), dtype=jnp.float32)
    # kaiming_uniform_(a=sqrt(5)) on (E, H): bound = 1/sqrt(fan_in) = 1/sqrt(H)
    bound = 1.0 / math.sqrt(H)
    weight = jax.random.uniform(kw, (E, H), dtype=jnp.float32,
                                minval=-bound, maxval=bound)

    prepared = prepare_gate_weight(weight, compute_dtype=compute_dtype)
    topk_idx, topk_wt, _ = moe_gate(
        hidden_states, prepared, top_k=top_k, norm_topk_prob=norm,
        routed_scaling_factor=scaling, compute_dtype=compute_dtype)
    jax.block_until_ready((topk_idx, topk_wt))

    ref_idx, ref_wt = _reference(hidden_states, weight, top_k, norm, scaling,
                                 compute_dtype)
    assert topk_idx.shape == (B * S, top_k) and topk_wt.shape == (B * S, top_k)
    # Near-exact logit ties may resolve differently under a different f32
    # accumulation order; weights must still match (both orders descending).
    mismatch = float(jnp.mean((topk_idx != ref_idx).astype(jnp.float32)))
    assert mismatch < 0.01, f"top-k index mismatch fraction {mismatch}"
    assert jnp.allclose(topk_wt, ref_wt, atol=atol, rtol=rtol), \
        "top-k weights mismatch"


if __name__ == "__main__":
    # Small shapes consistent with MoEGate.forward: (bsz, seq_len, hidden)
    # tokens routed over n_routed_experts with num_experts_per_tok picks.
    _check(B=2, S=8, H=64, E=16, top_k=6, seed=0)          # decode-sized N: adaptive tm -> 2 blocks
    _check(B=2, S=160, H=64, E=160, top_k=6, seed=1)       # E=160 padded to 256 lanes, multi-row tiles
    _check(B=2, S=160, H=64, E=160, top_k=6, seed=2,
           compute_dtype=jnp.float32)                      # exact f32 compute path
    _check(B=2, S=96, H=64, E=160, top_k=6, seed=3,
           norm=False, scaling=2.5, atol=1e-4, rtol=1e-4)  # scaled (non-norm) path
    print("KERNEL_OK")
</pallas_src>

<mosaic_0001>
module attributes {stable_mosaic.version = 11 : i64} {
  func.func @_moe_gate_kernel(%arg0: i32, %arg1: memref<8x64xbf16, #tpu.memory_space<vmem>>, %arg2: memref<64x128xbf16, #tpu.memory_space<vmem>>, %arg3: memref<8x6xi32, #tpu.memory_space<vmem>>, %arg4: memref<8x6xf32, #tpu.memory_space<vmem>>) attributes {dimension_semantics = [#tpu.dimension_semantics<parallel>], iteration_bounds = array<i64: 2>, scalar_prefetch = 0 : i64, scratch_operands = 0 : i64, tpu.core_type = #tpu.core_type<tc>, window_params = [{transform_indices = @transform_0, window_bounds = array<i64: 8, 64>}, {pipeline_mode = #tpu.pipeline_mode<synchronous>, transform_indices = @transform_1, window_bounds = array<i64: 64, 128>}, {transform_indices = @transform_2, window_bounds = array<i64: 8, 6>}, {transform_indices = @transform_3, window_bounds = array<i64: 8, 6>}]} {
    %c0 = arith.constant 0 : index
    %c0_0 = arith.constant 0 : index
    %0 = vector.load %arg1[%c0, %c0_0] : memref<8x64xbf16, #tpu.memory_space<vmem>>, vector<8x64xbf16>
    %c0_1 = arith.constant 0 : index
    %c0_2 = arith.constant 0 : index
    %1 = vector.load %arg2[%c0_1, %c0_2] : memref<64x128xbf16, #tpu.memory_space<vmem>>, vector<64x128xbf16>
    %cst = arith.constant dense<0.000000e+00> : vector<8x128xf32>
    %2 = tpu.matmul %0, %1, %cst {dimension_numbers = #tpu.dot_dimension_numbers<[1], [0], [0], [1], [0, 0, 1, 1], [], []>} : vector<8x64xbf16>, vector<64x128xbf16>, vector<8x128xf32> -> vector<8x128xf32>
    %3 = tpu.iota {dimensions = array<i32: 1>} : vector<8x128xi32>
    %c16_i32 = arith.constant 16 : i32
    %4 = vector.broadcast %c16_i32 : i32 to vector<8x128xi32>
    %5 = arith.cmpi slt, %3, %4 : vector<8x128xi32>
    %cst_3 = arith.constant 0xFF800000 : f32
    %6 = vector.broadcast %cst_3 : f32 to vector<8x128xf32>
    %7 = arith.select %5, %2, %6 : vector<8x128xi1>, vector<8x128xf32>
    %cst_4 = arith.constant dense<0xFF800000> : vector<8xf32>
    %8 = vector.multi_reduction <maximumf>, %7, %cst_4 [1] : vector<8x128xf32> to vector<8xf32>
    %9 = vector.shape_cast %8 : vector<8xf32> to vector<8x1xf32>
    %10 = vector.broadcast %9 : vector<8x1xf32> to vector<8x128xf32>
    %11 = arith.cmpf oge, %7, %10 : vector<8x128xf32>
    %c128_i32 = arith.constant 128 : i32
    %12 = vector.broadcast %c128_i32 : i32 to vector<8x128xi32>
    %13 = arith.select %11, %3, %12 : vector<8x128xi1>, vector<8x128xi32>
    %cst_5 = arith.constant dense<2147483647> : vector<8xi32>
    %14 = vector.multi_reduction <minsi>, %13, %cst_5 [1] : vector<8x128xi32> to vector<8xi32>
    %15 = vector.shape_cast %14 : vector<8xi32> to vector<8x1xi32>
    %16 = arith.subf %9, %9 : vector<8x1xf32>
    %17 = math.exp %16 : vector<8x1xf32>
    %c0_6 = arith.constant 0 : index
    %c0_7 = arith.constant 0 : index
    %18 = vector.load %arg3[%c0_6, %c0_7] : memref<8x6xi32, #tpu.memory_space<vmem>>, vector<8x1xi32>
    tpu.vector_store %arg3[%c0_6, %c0_7], %15 {strides = array<i32>} : memref<8x6xi32, #tpu.memory_space<vmem>>, vector<8x1xi32>,
    %c0_8 = arith.constant 0 : index
    %c0_9 = arith.constant 0 : index
    %19 = vector.load %arg4[%c0_8, %c0_9] : memref<8x6xf32, #tpu.memory_space<vmem>>, vector<8x1xf32>
    tpu.vector_store %arg4[%c0_8, %c0_9], %17 {strides = array<i32>} : memref<8x6xf32, #tpu.memory_space<vmem>>, vector<8x1xf32>,
    %20 = vector.broadcast %15 : vector<8x1xi32> to vector<8x128xi32>
    %21 = arith.cmpi eq, %3, %20 : vector<8x128xi32>
    %cst_10 = arith.constant 0xFF800000 : f32
    %22 = vector.broadcast %cst_10 : f32 to vector<8x128xf32>
    %23 = arith.select %21, %22, %7 : vector<8x128xi1>, vector<8x128xf32>
    %cst_11 = arith.constant dense<0xFF800000> : vector<8xf32>
    %24 = vector.multi_reduction <maximumf>, %23, %cst_11 [1] : vector<8x128xf32> to vector<8xf32>
    %25 = vector.shape_cast %24 : vector<8xf32> to vector<8x1xf32>
    %26 = vector.broadcast %25 : vector<8x1xf32> to vector<8x128xf32>
    %27 = arith.cmpf oge, %23, %26 : vector<8x128xf32>
    %c128_i32_12 = arith.constant 128 : i32
    %28 = vector.broadcast %c128_i32_12 : i32 to vector<8x128xi32>
    %29 = arith.select %27, %3, %28 : vector<8x128xi1>, vector<8x128xi32>
    %cst_13 = arith.constant dense<2147483647> : vector<8xi32>
    %30 = vector.multi_reduction <minsi>, %29, %cst_13 [1] : vector<8x128xi32> to vector<8xi32>
    %31 = vector.shape_cast %30 : vector<8xi32> to vector<8x1xi32>
    %32 = arith.subf %25, %9 : vector<8x1xf32>
    %33 = math.exp %32 : vector<8x1xf32>
    %c0_14 = arith.constant 0 : index
    %c1 = arith.constant 1 : index
    %34 = vector.load %arg3[%c0_14, %c1] : memref<8x6xi32, #tpu.memory_space<vmem>>, vector<8x1xi32>
    tpu.vector_store %arg3[%c0_14, %c1], %31 {strides = array<i32>} : memref<8x6xi32, #tpu.memory_space<vmem>>, vector<8x1xi32>,
    %c0_15 = arith.constant 0 : index
    %c1_16 = arith.constant 1 : index
    %35 = vector.load %arg4[%c0_15, %c1_16] : memref<8x6xf32, #tpu.memory_space<vmem>>, vector<8x1xf32>
    tpu.vector_store %arg4[%c0_15, %c1_16], %33 {strides = array<i32>} : memref<8x6xf32, #tpu.memory_space<vmem>>, vector<8x1xf32>,
    %36 = arith.addf %17, %33 : vector<8x1xf32>
    %37 = vector.broadcast %31 : vector<8x1xi32> to vector<8x128xi32>
    %38 = arith.cmpi eq, %3, %37 : vector<8x128xi32>
    %cst_17 = arith.constant 0xFF800000 : f32
    %39 = vector.broadcast %cst_17 : f32 to vector<8x128xf32>
    %40 = arith.select %38, %39, %23 : vector<8x128xi1>, vector<8x128xf32>
    %cst_18 = arith.constant dense<0xFF800000> : vector<8xf32>
    %41 = vector.multi_reduction <maximumf>, %40, %cst_18 [1] : vector<8x128xf32> to vector<8xf32>
    %42 = vector.shape_cast %41 : vector<8xf32> to vector<8x1xf32>
    %43 = vector.broadcast %42 : vector<8x1xf32> to vector<8x128xf32>
    %44 = arith.cmpf oge, %40, %43 : vector<8x128xf32>
    %c128_i32_19 = arith.constant 128 : i32
    %45 = vector.broadcast %c128_i32_19 : i32 to vector<8x128xi32>
    %46 = arith.select %44, %3, %45 : vector<8x128xi1>, vector<8x128xi32>
    %cst_20 = arith.constant dense<2147483647> : vector<8xi32>
    %47 = vector.multi_reduction <minsi>, %46, %cst_20 [1] : vector<8x128xi32> to vector<8xi32>
    %48 = vector.shape_cast %47 : vector<8xi32> to vector<8x1xi32>
    %49 = arith.subf %42, %9 : vector<8x1xf32>
    %50 = math.exp %49 : vector<8x1xf32>
    %c0_21 = arith.constant 0 : index
    %c2 = arith.constant 2 : index
    %51 = vector.load %arg3[%c0_21, %c2] : memref<8x6xi32, #tpu.memory_space<vmem>>, vector<8x1xi32>
    tpu.vector_store %arg3[%c0_21, %c2], %48 {strides = array<i32>} : memref<8x6xi32, #tpu.memory_space<vmem>>, vector<8x1xi32>,
    %c0_22 = arith.constant 0 : index
    %c2_23 = arith.constant 2 : index
    %52 = vector.load %arg4[%c0_22, %c2_23] : memref<8x6xf32, #tpu.memory_space<vmem>>, vector<8x1xf32>
    tpu.vector_store %arg4[%c0_22, %c2_23], %50 {strides = array<i32>} : memref<8x6xf32, #tpu.memory_space<vmem>>, vector<8x1xf32>,
    %53 = arith.addf %36, %50 : vector<8x1xf32>
    %54 = vector.broadcast %48 : vector<8x1xi32> to vector<8x128xi32>
    %55 = arith.cmpi eq, %3, %54 : vector<8x128xi32>
    %cst_24 = arith.constant 0xFF800000 : f32
    %56 = vector.broadcast %cst_24 : f32 to vector<8x128xf32>
    %57 = arith.select %55, %56, %40 : vector<8x128xi1>, vector<8x128xf32>
    %cst_25 = arith.constant dense<0xFF800000> : vector<8xf32>
    %58 = vector.multi_reduction <maximumf>, %57, %cst_25 [1] : vector<8x128xf32> to vector<8xf32>
    %59 = vector.shape_cast %58 : vector<8xf32> to vector<8x1xf32>
    %60 = vector.broadcast %59 : vector<8x1xf32> to vector<8x128xf32>
    %61 = arith.cmpf oge, %57, %60 : vector<8x128xf32>
    %c128_i32_26 = arith.constant 128 : i32
    %62 = vector.broadcast %c128_i32_26 : i32 to vector<8x128xi32>
    %63 = arith.select %61, %3, %62 : vector<8x128xi1>, vector<8x128xi32>
    %cst_27 = arith.constant dense<2147483647> : vector<8xi32>
    %64 = vector.multi_reduction <minsi>, %63, %cst_27 [1] : vector<8x128xi32> to vector<8xi32>
    %65 = vector.shape_cast %64 : vector<8xi32> to vector<8x1xi32>
    %66 = arith.subf %59, %9 : vector<8x1xf32>
    %67 = math.exp %66 : vector<8x1xf32>
    %c0_28 = arith.constant 0 : index
    %c3 = arith.constant 3 : index
    %68 = vector.load %arg3[%c0_28, %c3] : memref<8x6xi32, #tpu.memory_space<vmem>>, vector<8x1xi32>
    tpu.vector_store %arg3[%c0_28, %c3], %65 {strides = array<i32>} : memref<8x6xi32, #tpu.memory_space<vmem>>, vector<8x1xi32>,
    %c0_29 = arith.constant 0 : index
    %c3_30 = arith.constant 3 : index
    %69 = vector.load %arg4[%c0_29, %c3_30] : memref<8x6xf32, #tpu.memory_space<vmem>>, vector<8x1xf32>
    tpu.vector_store %arg4[%c0_29, %c3_30], %67 {strides = array<i32>} : memref<8x6xf32, #tpu.memory_space<vmem>>, vector<8x1xf32>,
    %70 = arith.addf %53, %67 : vector<8x1xf32>
    %71 = vector.broadcast %65 : vector<8x1xi32> to vector<8x128xi32>
    %72 = arith.cmpi eq, %3, %71 : vector<8x128xi32>
    %cst_31 = arith.constant 0xFF800000 : f32
    %73 = vector.broadcast %cst_31 : f32 to vector<8x128xf32>
    %74 = arith.select %72, %73, %57 : vector<8x128xi1>, vector<8x128xf32>
    %cst_32 = arith.constant dense<0xFF800000> : vector<8xf32>
    %75 = vector.multi_reduction <maximumf>, %74, %cst_32 [1] : vector<8x128xf32> to vector<8xf32>
    %76 = vector.shape_cast %75 : vector<8xf32> to vector<8x1xf32>
    %77 = vector.broadcast %76 : vector<8x1xf32> to vector<8x128xf32>
    %78 = arith.cmpf oge, %74, %77 : vector<8x128xf32>
    %c128_i32_33 = arith.constant 128 : i32
    %79 = vector.broadcast %c128_i32_33 : i32 to vector<8x128xi32>
    %80 = arith.select %78, %3, %79 : vector<8x128xi1>, vector<8x128xi32>
    %cst_34 = arith.constant dense<2147483647> : vector<8xi32>
    %81 = vector.multi_reduction <minsi>, %80, %cst_34 [1] : vector<8x128xi32> to vector<8xi32>
    %82 = vector.shape_cast %81 : vector<8xi32> to vector<8x1xi32>
    %83 = arith.subf %76, %9 : vector<8x1xf32>
    %84 = math.exp %83 : vector<8x1xf32>
    %c0_35 = arith.constant 0 : index
    %c4 = arith.constant 4 : index
    %85 = vector.load %arg3[%c0_35, %c4] : memref<8x6xi32, #tpu.memory_space<vmem>>, vector<8x1xi32>
    tpu.vector_store %arg3[%c0_35, %c4], %82 {strides = array<i32>} : memref<8x6xi32, #tpu.memory_space<vmem>>, vector<8x1xi32>,
    %c0_36 = arith.constant 0 : index
    %c4_37 = arith.constant 4 : index
    %86 = vector.load %arg4[%c0_36, %c4_37] : memref<8x6xf32, #tpu.memory_space<vmem>>, vector<8x1xf32>
    tpu.vector_store %arg4[%c0_36, %c4_37], %84 {strides = array<i32>} : memref<8x6xf32, #tpu.memory_space<vmem>>, vector<8x1xf32>,
    %87 = arith.addf %70, %84 : vector<8x1xf32>
    %88 = vector.broadcast %82 : vector<8x1xi32> to vector<8x128xi32>
    %89 = arith.cmpi eq, %3, %88 : vector<8x128xi32>
    %cst_38 = arith.constant 0xFF800000 : f32
    %90 = vector.broadcast %cst_38 : f32 to vector<8x128xf32>
    %91 = arith.select %89, %90, %74 : vector<8x128xi1>, vector<8x128xf32>
    %cst_39 = arith.constant dense<0xFF800000> : vector<8xf32>
    %92 = vector.multi_reduction <maximumf>, %91, %cst_39 [1] : vector<8x128xf32> to vector<8xf32>
    %93 = vector.shape_cast %92 : vector<8xf32> to vector<8x1xf32>
    %94 = vector.broadcast %93 : vector<8x1xf32> to vector<8x128xf32>
    %95 = arith.cmpf oge, %91, %94 : vector<8x128xf32>
    %c128_i32_40 = arith.constant 128 : i32
    %96 = vector.broadcast %c128_i32_40 : i32 to vector<8x128xi32>
    %97 = arith.select %95, %3, %96 : vector<8x128xi1>, vector<8x128xi32>
    %cst_41 = arith.constant dense<2147483647> : vector<8xi32>
    %98 = vector.multi_reduction <minsi>, %97, %cst_41 [1] : vector<8x128xi32> to vector<8xi32>
    %99 = vector.shape_cast %98 : vector<8xi32> to vector<8x1xi32>
    %100 = arith.subf %93, %9 : vector<8x1xf32>
    %101 = math.exp %100 : vector<8x1xf32>
    %c0_42 = arith.constant 0 : index
    %c5 = arith.constant 5 : index
    %102 = vector.load %arg3[%c0_42, %c5] : memref<8x6xi32, #tpu.memory_space<vmem>>, vector<8x1xi32>
    tpu.vector_store %arg3[%c0_42, %c5], %99 {strides = array<i32>} : memref<8x6xi32, #tpu.memory_space<vmem>>, vector<8x1xi32>,
    %c0_43 = arith.constant 0 : index
    %c5_44 = arith.constant 5 : index
    %103 = vector.load %arg4[%c0_43, %c5_44] : memref<8x6xf32, #tpu.memory_space<vmem>>, vector<8x1xf32>
    tpu.vector_store %arg4[%c0_43, %c5_44], %101 {strides = array<i32>} : memref<8x6xf32, #tpu.memory_space<vmem>>, vector<8x1xf32>,
    %104 = arith.addf %87, %101 : vector<8x1xf32>
    %c0_45 = arith.constant 0 : index
    %c0_46 = arith.constant 0 : index
    %105 = vector.load %arg4[%c0_45, %c0_46] : memref<8x6xf32, #tpu.memory_space<vmem>>, vector<8x6xf32>
    %106 = vector.broadcast %104 : vector<8x1xf32> to vector<8x6xf32>
    %107 = arith.divf %105, %106 : vector<8x6xf32>
    %c0_47 = arith.constant 0 : index
    %c0_48 = arith.constant 0 : index
    %108 = vector.load %arg4[%c0_47, %c0_48] : memref<8x6xf32, #tpu.memory_space<vmem>>, vector<8x6xf32>
    tpu.vector_store %arg4[%c0_47, %c0_48], %107 {strides = array<i32>} : memref<8x6xf32, #tpu.memory_space<vmem>>, vector<8x6xf32>,
    return
  }
  func.func @transform_0(%arg0: i32) -> (i32, i32) {
    %c0_i32 = arith.constant 0 : i32
    %c0_i32_0 = arith.constant 0 : i32
    return %arg0, %c0_i32 : i32, i32
  }
  func.func @transform_1(%arg0: i32) -> (i32, i32) {
    %c0_i32 = arith.constant 0 : i32
    %c0_i32_0 = arith.constant 0 : i32
    %c0_i32_1 = arith.constant 0 : i32
    return %c0_i32, %c0_i32_0 : i32, i32
  }
  func.func @transform_2(%arg0: i32) -> (i32, i32) {
    %c0_i32 = arith.constant 0 : i32
    %c0_i32_0 = arith.constant 0 : i32
    return %arg0, %c0_i32 : i32, i32
  }
  func.func @transform_3(%arg0: i32) -> (i32, i32) {
    %c0_i32 = arith.constant 0 : i32
    %c0_i32_0 = arith.constant 0 : i32
    return %arg0, %c0_i32 : i32, i32
  }
}

module attributes {stable_mosaic.version = 11 : i64} {
  func.func @_moe_gate_kernel(%arg0: i32, %arg1: memref<8x64xbf16, #tpu.memory_space<vmem>>, %arg2: memref<64x128xbf16, #tpu.memory_space<vmem>>, %arg3: memref<8x6xi32, #tpu.memory_space<vmem>>, %arg4: memref<8x6xf32, #tpu.memory_space<vmem>>) attributes {dimension_semantics = [#tpu.dimension_semantics<parallel>], iteration_bounds = array<i64: 2>, scalar_prefetch = 0 : i64, scratch_operands = 0 : i64, tpu.core_type = #tpu.core_type<tc>, window_params = [{transform_indices = @transform_0, window_bounds = array<i64: 8, 64>}, {pipeline_mode = #tpu.pipeline_mode<synchronous>, transform_indices = @transform_1, window_bounds = array<i64: 64, 128>}, {transform_indices = @transform_2, window_bounds = array<i64: 8, 6>}, {transform_indices = @transform_3, window_bounds = array<i64: 8, 6>}]} {
    %c0 = arith.constant 0 : index
    %c0_0 = arith.constant 0 : index
    %0 = vector.load %arg1[%c0, %c0_0] : memref<8x64xbf16, #tpu.memory_space<vmem>>, vector<8x64xbf16>
    %c0_1 = arith.constant 0 : index
    %c0_2 = arith.constant 0 : index
    %1 = vector.load %arg2[%c0_1, %c0_2] : memref<64x128xbf16, #tpu.memory_space<vmem>>, vector<64x128xbf16>
    %cst = arith.constant dense<0.000000e+00> : vector<8x128xf32>
    %2 = tpu.matmul %0, %1, %cst {dimension_numbers = #tpu.dot_dimension_numbers<[1], [0], [0], [1], [0, 0, 1, 1], [], []>} : vector<8x64xbf16>, vector<64x128xbf16>, vector<8x128xf32> -> vector<8x128xf32>
    %3 = tpu.iota {dimensions = array<i32: 1>} : vector<8x128xi32>
    %c16_i32 = arith.constant 16 : i32
    %4 = vector.broadcast %c16_i32 : i32 to vector<8x128xi32>
    %5 = arith.cmpi slt, %3, %4 : vector<8x128xi32>
    %cst_3 = arith.constant 0xFF800000 : f32
    %6 = vector.broadcast %cst_3 : f32 to vector<8x128xf32>
    %7 = arith.select %5, %2, %6 : vector<8x128xi1>, vector<8x128xf32>
    %cst_4 = arith.constant dense<0xFF800000> : vector<8xf32>
    %8 = vector.multi_reduction <maximumf>, %7, %cst_4 [1] : vector<8x128xf32> to vector<8xf32>
    %9 = vector.shape_cast %8 : vector<8xf32> to vector<8x1xf32>
    %10 = vector.broadcast %9 : vector<8x1xf32> to vector<8x128xf32>
    %11 = arith.cmpf oge, %7, %10 : vector<8x128xf32>
    %c128_i32 = arith.constant 128 : i32
    %12 = vector.broadcast %c128_i32 : i32 to vector<8x128xi32>
    %13 = arith.select %11, %3, %12 : vector<8x128xi1>, vector<8x128xi32>
    %cst_5 = arith.constant dense<2147483647> : vector<8xi32>
    %14 = vector.multi_reduction <minsi>, %13, %cst_5 [1] : vector<8x128xi32> to vector<8xi32>
    %15 = vector.shape_cast %14 : vector<8xi32> to vector<8x1xi32>
    %16 = arith.subf %9, %9 : vector<8x1xf32>
    %17 = math.exp %16 : vector<8x1xf32>
    %c0_6 = arith.constant 0 : index
    %c0_7 = arith.constant 0 : index
    %18 = vector.load %arg3[%c0_6, %c0_7] : memref<8x6xi32, #tpu.memory_space<vmem>>, vector<8x1xi32>
    tpu.vector_store %arg3[%c0_6, %c0_7], %15 {strides = array<i32>} : memref<8x6xi32, #tpu.memory_space<vmem>>, vector<8x1xi32>,
    %c0_8 = arith.constant 0 : index
    %c0_9 = arith.constant 0 : index
    %19 = vector.load %arg4[%c0_8, %c0_9] : memref<8x6xf32, #tpu.memory_space<vmem>>, vector<8x1xf32>
    tpu.vector_store %arg4[%c0_8, %c0_9], %17 {strides = array<i32>} : memref<8x6xf32, #tpu.memory_space<vmem>>, vector<8x1xf32>,
    %20 = vector.broadcast %15 : vector<8x1xi32> to vector<8x128xi32>
    %21 = arith.cmpi eq, %3, %20 : vector<8x128xi32>
    %cst_10 = arith.constant 0xFF800000 : f32
    %22 = vector.broadcast %cst_10 : f32 to vector<8x128xf32>
    %23 = arith.select %21, %22, %7 : vector<8x128xi1>, vector<8x128xf32>
    %cst_11 = arith.constant dense<0xFF800000> : vector<8xf32>
    %24 = vector.multi_reduction <maximumf>, %23, %cst_11 [1] : vector<8x128xf32> to vector<8xf32>
    %25 = vector.shape_cast %24 : vector<8xf32> to vector<8x1xf32>
    %26 = vector.broadcast %25 : vector<8x1xf32> to vector<8x128xf32>
    %27 = arith.cmpf oge, %23, %26 : vector<8x128xf32>
    %c128_i32_12 = arith.constant 128 : i32
    %28 = vector.broadcast %c128_i32_12 : i32 to vector<8x128xi32>
    %29 = arith.select %27, %3, %28 : vector<8x128xi1>, vector<8x128xi32>
    %cst_13 = arith.constant dense<2147483647> : vector<8xi32>
    %30 = vector.multi_reduction <minsi>, %29, %cst_13 [1] : vector<8x128xi32> to vector<8xi32>
    %31 = vector.shape_cast %30 : vector<8xi32> to vector<8x1xi32>
    %32 = arith.subf %25, %9 : vector<8x1xf32>
    %33 = math.exp %32 : vector<8x1xf32>
    %c0_14 = arith.constant 0 : index
    %c1 = arith.constant 1 : index
    %34 = vector.load %arg3[%c0_14, %c1] : memref<8x6xi32, #tpu.memory_space<vmem>>, vector<8x1xi32>
    tpu.vector_store %arg3[%c0_14, %c1], %31 {strides = array<i32>} : memref<8x6xi32, #tpu.memory_space<vmem>>, vector<8x1xi32>,
    %c0_15 = arith.constant 0 : index
    %c1_16 = arith.constant 1 : index
    %35 = vector.load %arg4[%c0_15, %c1_16] : memref<8x6xf32, #tpu.memory_space<vmem>>, vector<8x1xf32>
    tpu.vector_store %arg4[%c0_15, %c1_16], %33 {strides = array<i32>} : memref<8x6xf32, #tpu.memory_space<vmem>>, vector<8x1xf32>,
    %36 = arith.addf %17, %33 : vector<8x1xf32>
    %37 = vector.broadcast %31 : vector<8x1xi32> to vector<8x128xi32>
    %38 = arith.cmpi eq, %3, %37 : vector<8x128xi32>
    %cst_17 = arith.constant 0xFF800000 : f32
    %39 = vector.broadcast %cst_17 : f32 to vector<8x128xf32>
    %40 = arith.select %38, %39, %23 : vector<8x128xi1>, vector<8x128xf32>
    %cst_18 = arith.constant dense<0xFF800000> : vector<8xf32>
    %41 = vector.multi_reduction <maximumf>, %40, %cst_18 [1] : vector<8x128xf32> to vector<8xf32>
    %42 = vector.shape_cast %41 : vector<8xf32> to vector<8x1xf32>
    %43 = vector.broadcast %42 : vector<8x1xf32> to vector<8x128xf32>
    %44 = arith.cmpf oge, %40, %43 : vector<8x128xf32>
    %c128_i32_19 = arith.constant 128 : i32
    %45 = vector.broadcast %c128_i32_19 : i32 to vector<8x128xi32>
    %46 = arith.select %44, %3, %45 : vector<8x128xi1>, vector<8x128xi32>
    %cst_20 = arith.constant dense<2147483647> : vector<8xi32>
    %47 = vector.multi_reduction <minsi>, %46, %cst_20 [1] : vector<8x128xi32> to vector<8xi32>
    %48 = vector.shape_cast %47 : vector<8xi32> to vector<8x1xi32>
    %49 = arith.subf %42, %9 : vector<8x1xf32>
    %50 = math.exp %49 : vector<8x1xf32>
    %c0_21 = arith.constant 0 : index
    %c2 = arith.constant 2 : index
    %51 = vector.load %arg3[%c0_21, %c2] : memref<8x6xi32, #tpu.memory_space<vmem>>, vector<8x1xi32>
    tpu.vector_store %arg3[%c0_21, %c2], %48 {strides = array<i32>} : memref<8x6xi32, #tpu.memory_space<vmem>>, vector<8x1xi32>,
    %c0_22 = arith.constant 0 : index
    %c2_23 = arith.constant 2 : index
    %52 = vector.load %arg4[%c0_22, %c2_23] : memref<8x6xf32, #tpu.memory_space<vmem>>, vector<8x1xf32>
    tpu.vector_store %arg4[%c0_22, %c2_23], %50 {strides = array<i32>} : memref<8x6xf32, #tpu.memory_space<vmem>>, vector<8x1xf32>,
    %53 = arith.addf %36, %50 : vector<8x1xf32>
    %54 = vector.broadcast %48 : vector<8x1xi32> to vector<8x128xi32>
    %55 = arith.cmpi eq, %3, %54 : vector<8x128xi32>
    %cst_24 = arith.constant 0xFF800000 : f32
    %56 = vector.broadcast %cst_24 : f32 to vector<8x128xf32>
    %57 = arith.select %55, %56, %40 : vector<8x128xi1>, vector<8x128xf32>
    %cst_25 = arith.constant dense<0xFF800000> : vector<8xf32>
    %58 = vector.multi_reduction <maximumf>, %57, %cst_25 [1] : vector<8x128xf32> to vector<8xf32>
    %59 = vector.shape_cast %58 : vector<8xf32> to vector<8x1xf32>
    %60 = vector.broadcast %59 : vector<8x1xf32> to vector<8x128xf32>
    %61 = arith.cmpf oge, %57, %60 : vector<8x128xf32>
    %c128_i32_26 = arith.constant 128 : i32
    %62 = vector.broadcast %c128_i32_26 : i32 to vector<8x128xi32>
    %63 = arith.select %61, %3, %62 : vector<8x128xi1>, vector<8x128xi32>
    %cst_27 = arith.constant dense<2147483647> : vector<8xi32>
    %64 = vector.multi_reduction <minsi>, %63, %cst_27 [1] : vector<8x128xi32> to vector<8xi32>
    %65 = vector.shape_cast %64 : vector<8xi32> to vector<8x1xi32>
    %66 = arith.subf %59, %9 : vector<8x1xf32>
    %67 = math.exp %66 : vector<8x1xf32>
    %c0_28 = arith.constant 0 : index
    %c3 = arith.constant 3 : index
    %68 = vector.load %arg3[%c0_28, %c3] : memref<8x6xi32, #tpu.memory_space<vmem>>, vector<8x1xi32>
    tpu.vector_store %arg3[%c0_28, %c3], %65 {strides = array<i32>} : memref<8x6xi32, #tpu.memory_space<vmem>>, vector<8x1xi32>,
    %c0_29 = arith.constant 0 : index
    %c3_30 = arith.constant 3 : index
    %69 = vector.load %arg4[%c0_29, %c3_30] : memref<8x6xf32, #tpu.memory_space<vmem>>, vector<8x1xf32>
    tpu.vector_store %arg4[%c0_29, %c3_30], %67 {strides = array<i32>} : memref<8x6xf32, #tpu.memory_space<vmem>>, vector<8x1xf32>,
    %70 = arith.addf %53, %67 : vector<8x1xf32>
    %71 = vector.broadcast %65 : vector<8x1xi32> to vector<8x128xi32>
    %72 = arith.cmpi eq, %3, %71 : vector<8x128xi32>
    %cst_31 = arith.constant 0xFF800000 : f32
    %73 = vector.broadcast %cst_31 : f32 to vector<8x128xf32>
    %74 = arith.select %72, %73, %57 : vector<8x128xi1>, vector<8x128xf32>
    %cst_32 = arith.constant dense<0xFF800000> : vector<8xf32>
    %75 = vector.multi_reduction <maximumf>, %74, %cst_32 [1] : vector<8x128xf32> to vector<8xf32>
    %76 = vector.shape_cast %75 : vector<8xf32> to vector<8x1xf32>
    %77 = vector.broadcast %76 : vector<8x1xf32> to vector<8x128xf32>
    %78 = arith.cmpf oge, %74, %77 : vector<8x128xf32>
    %c128_i32_33 = arith.constant 128 : i32
    %79 = vector.broadcast %c128_i32_33 : i32 to vector<8x128xi32>
    %80 = arith.select %78, %3, %79 : vector<8x128xi1>, vector<8x128xi32>
    %cst_34 = arith.constant dense<2147483647> : vector<8xi32>
    %81 = vector.multi_reduction <minsi>, %80, %cst_34 [1] : vector<8x128xi32> to vector<8xi32>
    %82 = vector.shape_cast %81 : vector<8xi32> to vector<8x1xi32>
    %83 = arith.subf %76, %9 : vector<8x1xf32>
    %84 = math.exp %83 : vector<8x1xf32>
    %c0_35 = arith.constant 0 : index
    %c4 = arith.constant 4 : index
    %85 = vector.load %arg3[%c0_35, %c4] : memref<8x6xi32, #tpu.memory_space<vmem>>, vector<8x1xi32>
    tpu.vector_store %arg3[%c0_35, %c4], %82 {strides = array<i32>} : memref<8x6xi32, #tpu.memory_space<vmem>>, vector<8x1xi32>,
    %c0_36 = arith.constant 0 : index
    %c4_37 = arith.constant 4 : index
    %86 = vector.load %arg4[%c0_36, %c4_37] : memref<8x6xf32, #tpu.memory_space<vmem>>, vector<8x1xf32>
    tpu.vector_store %arg4[%c0_36, %c4_37], %84 {strides = array<i32>} : memref<8x6xf32, #tpu.memory_space<vmem>>, vector<8x1xf32>,
    %87 = arith.addf %70, %84 : vector<8x1xf32>
    %88 = vector.broadcast %82 : vector<8x1xi32> to vector<8x128xi32>
    %89 = arith.cmpi eq, %3, %88 : vector<8x128xi32>
    %cst_38 = arith.constant 0xFF800000 : f32
    %90 = vector.broadcast %cst_38 : f32 to vector<8x128xf32>
    %91 = arith.select %89, %90, %74 : vector<8x128xi1>, vector<8x128xf32>
    %cst_39 = arith.constant dense<0xFF800000> : vector<8xf32>
    %92 = vector.multi_reduction <maximumf>, %91, %cst_39 [1] : vector<8x128xf32> to vector<8xf32>
    %93 = vector.shape_cast %92 : vector<8xf32> to vector<8x1xf32>
    %94 = vector.broadcast %93 : vector<8x1xf32> to vector<8x128xf32>
    %95 = arith.cmpf oge, %91, %94 : vector<8x128xf32>
    %c128_i32_40 = arith.constant 128 : i32
    %96 = vector.broadcast %c128_i32_40 : i32 to vector<8x128xi32>
    %97 = arith.select %95, %3, %96 : vector<8x128xi1>, vector<8x128xi32>
    %cst_41 = arith.constant dense<2147483647> : vector<8xi32>
    %98 = vector.multi_reduction <minsi>, %97, %cst_41 [1] : vector<8x128xi32> to vector<8xi32>
    %99 = vector.shape_cast %98 : vector<8xi32> to vector<8x1xi32>
    %100 = arith.subf %93, %9 : vector<8x1xf32>
    %101 = math.exp %100 : vector<8x1xf32>
    %c0_42 = arith.constant 0 : index
    %c5 = arith.constant 5 : index
    %102 = vector.load %arg3[%c0_42, %c5] : memref<8x6xi32, #tpu.memory_space<vmem>>, vector<8x1xi32>
    tpu.vector_store %arg3[%c0_42, %c5], %99 {strides = array<i32>} : memref<8x6xi32, #tpu.memory_space<vmem>>, vector<8x1xi32>,
    %c0_43 = arith.constant 0 : index
    %c5_44 = arith.constant 5 : index
    %103 = vector.load %arg4[%c0_43, %c5_44] : memref<8x6xf32, #tpu.memory_space<vmem>>, vector<8x1xf32>
    tpu.vector_store %arg4[%c0_43, %c5_44], %101 {strides = array<i32>} : memref<8x6xf32, #tpu.memory_space<vmem>>, vector<8x1xf32>,
    %104 = arith.addf %87, %101 : vector<8x1xf32>
    %c0_45 = arith.constant 0 : index
    %c0_46 = arith.constant 0 : index
    %105 = vector.load %arg4[%c0_45, %c0_46] : memref<8x6xf32, #tpu.memory_space<vmem>>, vector<8x6xf32>
    %106 = vector.broadcast %104 : vector<8x1xf32> to vector<8x6xf32>
    %107 = arith.divf %105, %106 : vector<8x6xf32>
    %c0_47 = arith.constant 0 : index
    %c0_48 = arith.constant 0 : index
    %108 = vector.load %arg4[%c0_47, %c0_48] : memref<8x6xf32, #tpu.memory_space<vmem>>, vector<8x6xf32>
    tpu.vector_store %arg4[%c0_47, %c0_48], %107 {strides = array<i32>} : memref<8x6xf32, #tpu.memory_space<vmem>>, vector<8x6xf32>,
    return
  }
  func.func @transform_0(%arg0: i32) -> (i32, i32) {
    %c0_i32 = arith.constant 0 : i32
    %c0_i32_0 = arith.constant 0 : i32
    return %arg0, %c0_i32 : i32, i32
  }
  func.func @transform_1(%arg0: i32) -> (i32, i32) {
    %c0_i32 = arith.constant 0 : i32
    %c0_i32_0 = arith.constant 0 : i32
    %c0_i32_1 = arith.constant 0 : i32
    return %c0_i32, %c0_i32_0 : i32, i32
  }
  func.func @transform_2(%arg0: i32) -> (i32, i32) {
    %c0_i32 = arith.constant 0 : i32
    %c0_i32_0 = arith.constant 0 : i32
    return %arg0, %c0_i32 : i32, i32
  }
  func.func @transform_3(%arg0: i32) -> (i32, i32) {
    %c0_i32 = arith.constant 0 : i32
    %c0_i32_0 = arith.constant 0 : i32
    return %arg0, %c0_i32 : i32, i32
  }
}

</mosaic_0001>

<bundles_post_ra>
// kernel: tpu_custom_call.1
= control target key start
LH: loop header
LB: loop body
LE: loop exit
PB: predicated region body
PF: predicated region fallthrough
CT: control target
= control target key end

     0   :  { %9 = vsyncpa [#allocation3], 0  ;;  %s957_s0 = inlined_call_operand.hbm [shape: bf16[16,64], index: 0, kind: input, shape index: {}]   ;;  %s958_s1 = inlined_call_operand.hbm [shape: bf16[64,128], index: 1, kind: input, shape index: {}]   ;;  %s959_s2 = inlined_call_operand.vmem [shape: s32[16,6], index: 2, kind: output, shape index: {0}]   ;;  %s960_s3 = inlined_call_operand.vmem [shape: f32[16,6], index: 3, kind: output, shape index: {1}]  }
   0x1   :  { %11 = vsyncpa [#allocation3 + $0x1], 0 }
   0x2   :  { %12 = vsyncpa [#allocation5], 0  ;;  %s791_s12 = smov 0   ;;  %s793_s13 = smov 0  }
   0x3   :  { %s795_s14 = smov 0   ;;  %s797_s15 = smov 0  }
   0x4 LB: > { %s810_s16 = sadd.s32 4294967295, %s763_s15   ;;  %p38_p0 = scmp.ne.s32.totalorder %s755_s13, %s751_s12  ;;  %s763_s15 = sphi %s797_s15, %s975_s15   ;;  %s759_s14 = sphi %s795_s14, %s974_s14   ;;  %s755_s13 = sphi %s793_s13, %s973_s13   ;;  %s751_s12 = sphi %s791_s12, %s972_s12  }
   0x5   : > { %p961_p1 = scmp.eq.s32.totalorder %s810_s16, 0  ;;  %p565_p2 = scmp.ge.s32.totalorder %s763_s15, 1 }
   0x6   : > { %p122_p3 = scmp.lt.s32.totalorder %s763_s15, 3  ;;  %s765_s19 = smov [#allocation4]  }
   0x7   : > { %p818_p4 = por %p961_p1, %p38_p0  ;;  %s134_s20 = sshll.u32 %s765_s19, 4  ;;  %s135_s20 = int_to_ptr.vmem [resolvable:$true] %s134_s20 }
   0x8   : > { %p822_p5 = pnand %p565_p2, %p122_p3  ;;  %s835_s22 = sadd.s32 1, %s763_s15  }
   0x9   : > { %s964_s17 = scalar_select %p818_p4, 1, 0 }
   0xa   : > { %s965_s18 = scalar_select %p822_p5, 1, 0 }
   0xb   : > { %p605_p6 = pneg %p822_p5  ;;  %s25_s23 = sadd.s32 1, %s759_s14 }
   0xc   : > { %s22_s24 = ssub.s32 %s763_s15, %s835_s22  ;;  %s682_s25 = scalar_lea.vmem %s135_s20, 512 }
   0xd   : > { %p830_p7 = pnand %p605_p6, %p961_p1  ;;  %p683_p9 = scmp.ne.s32.totalorder %s135_s20, %s682_s25 }
   0xe   : > { %p690_p12 = scmp.lt.s32.totalorder %s135_s20, %s135_s20  ;;  %p691_p13 = scmp.lt.s32.totalorder %s682_s25, %s682_s25 }
   0xf   : > { %p673_p8 = pneg %p830_p7 }
  0x10   : > { %p692_p0 = por %p691_p13, %p690_p12 }
  0x11   : > { %p685_p10 = pnand %p683_p9, %p673_p8 }
  0x13   : > { %p686_p11 = pneg %p685_p10 }
  0x15   : > { %p693_p2 = pnand %p692_p0, %p686_p11 }
  0x17   : > { %696 = shalt.err (!%p693_p2)
}
  0x18   : > { %s766_s26 = smov 64   ;;  %s767_s27 = smov 4  }
  0x19   : > { %608 = dma.hbm_to_vmem [thread:$0]  (!%p830_p7), %s958_s1, 512, %s135_s20, [#allocation5], %s766_s26, %s766_s26, %s767_s27  }
  0x1a   : > { %p23_p3 = scmp.eq.s32.totalorder %s22_s24, 0  ;;  %p32_p6 = scmp.ne.s32.totalorder %s759_s14, %s755_s13 }
  0x1b   : > { %p33_p8 = scmp.eq.s32.totalorder %s763_s15, 0  ;;  %p614_p9 = scmp.lt.s32.totalorder %s763_s15, 2 }
  0x1c   : > { %s852_s30 = scalar_select %p23_p3, %s759_s14, %s25_s23  }
  0x1d   : > { %p34_p10 = por %p33_p8, %p32_p6  ;;  %s148_s4 = sand.u32 1, %s759_s14  }
  0x1e   : > { %s568_s5 = sshll.u32 %s148_s4, 2  ;;  %s569_s6 = sshll.u32 %s763_s15, 6 }
  0x1f   : > { %s859_s9 = scalar_lea.hbm %s957_s0, %s569_s6  ;;  %s152_s10 = scalar_lea.vmem [#allocation2], %s568_s5 }
  0x20   : > { %s159_s11 = sshll.u32 %s152_s10, 4  ;;  %p861_p7 = pnand %p614_p9, %p34_p10  ;;  %s160_s11 = int_to_ptr.vmem [resolvable:$true] %s159_s11 }
  0x21   : > { %s149_s19 = scalar_lea.sflag [#allocation3], %s148_s4  ;;  %s697_s20 = scalar_lea.hbm %s859_s9, 64 }
  0x22   : > { %p698_p11 = scmp.ne.s32.totalorder %s859_s9, %s697_s20  ;;  %p699_p12 = pneg %p861_p7 }
  0x23   : > { %s702_s23 = scalar_lea.hbm %s957_s0, 128  ;;  %p703_p2 = scmp.lt.s32.totalorder %s859_s9, %s957_s0 }
  0x24   : > { %p700_p13 = pnand %p699_p12, %p698_p11  ;;  %p704_p3 = scmp.lt.s32.totalorder %s702_s23, %s697_s20 }
  0x26   : > { %p701_p0 = pneg %p700_p13  ;;  %p705_p6 = por %p704_p3, %p703_p2 }
  0x28   : > { %p706_p8 = pnand %p705_p6, %p701_p0 }
  0x2a   : > { %709 = shalt.err (!%p706_p8)
}
  0x2b   : > { %s710_s26 = scalar_lea.vmem %s160_s11, 64  ;;  %s768_s27 = smov [#allocation2]  }
  0x2c   : > { %p711_p9 = scmp.ne.s32.totalorder %s160_s11, %s710_s26  ;;  %s715_s28 = sshll.u32 %s768_s27, 4  ;;  %s716_s28 = int_to_ptr.vmem [resolvable:$false] %s715_s28 }
  0x2d   : > { %s717_s29 = scalar_lea.vmem %s716_s28, 128  ;;  %p718_p11 = scmp.lt.s32.totalorder %s160_s11, %s716_s28 }
  0x2e   : > { %p713_p10 = pnand %p711_p9, %p699_p12  ;;  %p719_p13 = scmp.lt.s32.totalorder %s717_s29, %s710_s26 }
  0x30   : > { %p714_p1 = pneg %p713_p10  ;;  %p720_p4 = por %p719_p13, %p718_p11 }
  0x32   : > { %p721_p5 = pnand %p720_p4, %p714_p1 }
  0x34   : > { %724 = shalt.err (!%p721_p5)
}
  0x35   : > { %612 = dma.hbm_to_vmem [thread:$0]  (!%p861_p7), %s859_s9, 64, %s160_s11, %s149_s19  }
  0x36   : > { %p968_p0 = scmp.ne.s32.totalorder %s965_s18, 0 }
  0x37   : > { %s170_s4 = sand.u32 (!%p968_p0), 1, %s755_s13   ;;  %p969_p12 = scmp.ne.s32.totalorder (!%p968_p0), %s964_s17, 0 }
  0x38   : > { %168 = sbr.rel (%p968_p0) target bundleno = 2843 (0xb1b), region = 28  ;;  %s571_s5 = sshll.u32 (!%p968_p0), %s170_s4, 2 }
  0x39   : > { %s171_s6 = scalar_lea.sflag (!%p968_p0), [#allocation3], %s170_s4  ;;  %s174_s7 = scalar_lea.vmem (!%p968_p0), [#allocation2], %s571_s5 }
  0x3d   : > { %742 = dma.done.wait (%p969_p12), %s171_s6, 64  }
  0x3e   : > { %744 = vsyncadd (%p969_p12), %s171_s6, 4294967232  ;;  %p970_p1 = scmp.eq.s32.totalorder %s810_s16, 0 }
  0x40   : > { %746 = dma.done.wait (%p970_p1), [#allocation5], 512   ;;  %p971_p4 = pmov %p970_p1 }
  0x41   : > { %v769_v0 = vmov 0.0   ;;  %vm770_vm0 = vmmov 0   ;;  %v653_v1 = vld [vmem:[#allocation4 + $0x18] sm:$0xff]   ;;  %v654_v2 = vld [vmem:[#allocation4 + $0x10] sm:$0xff]   ;;  %v655_v3 = vld [vmem:[#allocation4 + $0x8] sm:$0xff]   ;;  %vm246_vm1 = vcmask 523264   ;;  %v290_v6 = vlaneseq }
  0x42   : > { %748 = vsyncadd (%p971_p4), [#allocation5], 4294966784  ;;  %587 = vmatprep.subr.bf16.mxu0 %v769_v0  ;;  %595 = vmatprep.mubr.msk.bf16.mxu0 %vm770_vm0, %v769_v0  ;;  %v656_v4 = vld [vmem:[#allocation4] sm:$0xff]   ;;  %v213_v5 = vld [vmem:[%s174_s7] sm:$0xf]  ;;  %p204_p5 = scmp.lt.s32.totalorder %s810_s16, 1 }
  0x43   : > { %588 = vmatpush3.bf16.msra.mxu0 %v653_v1  ;;  %v890_v7 = vand.u32 127, %v290_v6  ;;  %vm315_vm4 = vcmask 7168   ;;  %vm341_vm8 = vcmask 15368   ;;  %vm368_vm12 = vcmask 23568  }
  0x44   : > { %589 = vmatprep.subr.bf16.mxu0 %v769_v0  ;;  %s977_s16 = smov (!%p204_p5, %s810_s16), 1  ;;  %vm395_vm0 = vcmask 31768  }
  0x45   : > { %vm292_vm2 = vcmp.lt.s32.totalorder %v890_v7, 16  ;;  %s573_s17 = sshll.u32 %s977_s16, 3 }
  0x46   : > { %s904_s9 = scalar_lea.vmem %s960_s3, %s573_s17  ;;  %s910_s11 = scalar_lea.vmem %s959_s2, %s573_s17 }
  0x47   : > { %590 = vmatpush3.bf16.msra.mxu0 %v654_v2 }
  0x48   : > { %591 = vmatprep.subr.bf16.mxu0 %v769_v0 }
  0x4b   : > { %592 = vmatpush3.bf16.msra.mxu0 %v655_v3 }
  0x4c   : > { %593 = vmatprep.subr.bf16.mxu0 %v769_v0 }
  0x4f   : > { %594 = vmatpush3.bf16.msra.mxu0 %v656_v4 }
  0x52   : > { %596 = vmatmul.mubr.msk.bf16.vlgmr.msra.gmra.mxu0 %vm246_vm1, %v213_v5 }
 0x112   : > { %v284_v8 = vpop.f32.mrf.mxu0 }
 0x113   : > { %v293_v9 = vsel %vm292_vm2, %v284_v8, -inf }
 0x114   : > { %294 = vmax.xlane.f32.xlu0 %v293_v9  ;;  %v597_v10 = vpop.f32.mrf.mxu0 }
 0x116   : > { %v287_v11 = vpop.f32.mrf.mxu0 }
 0x118   : > { %v598_v12 = vpop.f32.mrf.mxu0 }
 0x19d   : > { %v893_v13 = vpop.xlane.xlu0 %294 }
 0x19e   : > { %v312_v14 = vsub.f32 %v893_v13, %v893_v13  ;;  %vm296_vm3 = vcmp.ge.f32.partialorder %v293_v9, %v893_v13 }
 0x19f   : > { %v297_v15 = vsel %vm296_vm3, %v890_v7, 128 }
 0x1a0   : > { %v313_v16 = vmul.f32 1.442695, %v312_v14  ;;  %v299_v17 = vshra.s32 %v297_v15, 16  ;;  %v298_v20 = vand.u32 65535, %v297_v15 }
 0x1a2   : > { %657 = vpow2.f32 %v313_v16  ;;  %v301_v18 = vcvt.s32.f32 %v299_v17  ;;  %v300_v22 = vcvt.s32.f32 %v298_v20 }
 0x1a4   : > { %302 = vmin.xlane.f32.xlu0 %v301_v18 }
 0x1af   : > { %v658_v19 = vpop.eup %657 }
 0x1b0   : > { %317 = vst.msk [vmem:[%s904_s9] sm:$0xff] %vm315_vm4, %v658_v19 }
 0x22d   : > { %v303_v21 = vpop.xlane.xlu0 %302 }
 0x22e   : > { %vm304_vm5 = vcmp.eq.f32.partialorder %v301_v18, %v303_v21  ;;  %v309_v24 = vcvt.f32.s32 %v303_v21 }
 0x22f   : > { %v305_v23 = vsel %vm304_vm5, %v300_v22, inf }
 0x230   : > { %306 = vmin.xlane.f32.xlu1 %v305_v23  ;;  %v310_v26 = vshll.u32 %v309_v24, 16 }
 0x2b9   : > { %v307_v25 = vpop.xlane.xlu1 %306 }
 0x2ba   : > { %v308_v27 = vcvt.f32.s32 %v307_v25 }
 0x2bc   : > { %v311_v28 = vadd.s32 %v310_v26, %v308_v27 }
 0x2be   : > { %316 = vst.msk [vmem:[%s910_s11] sm:$0xff] %vm315_vm4, %v311_v28  ;;  %vm318_vm6 = vcmp.eq.s32.totalorder %v890_v7, %v311_v28  ;;  %vm422_vm4 = vcmask 39968  }
 0x2bf   : > { %v319_v29 = vsel %vm318_vm6, -inf, %v293_v9 }
 0x2c0   : > { %320 = vmax.xlane.f32.xlu1 %v319_v29 }
 0x349   : > { %v321_v30 = vpop.xlane.xlu1 %320 }
 0x34a   : > { %vm322_vm7 = vcmp.ge.f32.partialorder %v319_v29, %v321_v30  ;;  %v338_v31 = vsub.f32 %v321_v30, %v893_v13 }
 0x34b   : > { %v323_v32 = vsel %vm322_vm7, %v890_v7, 128 }
 0x34c   : > { %v339_v33 = vmul.f32 1.442695, %v338_v31  ;;  %v325_v34 = vshra.s32 %v323_v32, 16  ;;  %v324_v37 = vand.u32 65535, %v323_v32 }
 0x34e   : > { %659 = vpow2.f32 %v339_v33  ;;  %v327_v35 = vcvt.s32.f32 %v325_v34  ;;  %v326_v39 = vcvt.s32.f32 %v324_v37 }
 0x350   : > { %328 = vmin.xlane.f32.xlu0 %v327_v35 }
 0x35b   : > { %v660_v36 = vpop.eup %659 }
 0x35c   : > { %343 = vst.msk [vmem:[%s904_s9] sm:$0xff] %vm341_vm8, %v660_v36  ;;  %v344_v53 = vadd.f32 %v660_v36, %v658_v19 }
 0x3d9   : > { %v329_v38 = vpop.xlane.xlu0 %328 }
 0x3da   : > { %vm330_vm9 = vcmp.eq.f32.partialorder %v327_v35, %v329_v38  ;;  %v335_v41 = vcvt.f32.s32 %v329_v38 }
 0x3db   : > { %v331_v40 = vsel %vm330_vm9, %v326_v39, inf  ;;  %vm456_vm9 = vcmask 48128  }
 0x3dc   : > { %332 = vmin.xlane.f32.xlu1 %v331_v40  ;;  %v336_v43 = vshll.u32 %v335_v41, 16 }
 0x465   : > { %v333_v42 = vpop.xlane.xlu1 %332 }
 0x466   : > { %v334_v44 = vcvt.f32.s32 %v333_v42 }
 0x468   : > { %v337_v45 = vadd.s32 %v336_v43, %v334_v44 }
 0x46a   : > { %342 = vst.msk [vmem:[%s910_s11] sm:$0xff] %vm341_vm8, %v337_v45  ;;  %vm345_vm10 = vcmp.eq.s32.totalorder %v890_v7, %v337_v45  ;;  %vm449_vm8 = vcmask 48168  }
 0x46b   : > { %v346_v46 = vsel %vm345_vm10, -inf, %v319_v29 }
 0x46c   : > { %347 = vmax.xlane.f32.xlu0 %v346_v46 }
 0x4f5   : > { %v348_v47 = vpop.xlane.xlu0 %347 }
 0x4f6   : > { %vm349_vm11 = vcmp.ge.f32.partialorder %v346_v46, %v348_v47  ;;  %v365_v48 = vsub.f32 %v348_v47, %v893_v13 }
 0x4f7   : > { %v350_v49 = vsel %vm349_vm11, %v890_v7, 128 }
 0x4f8   : > { %v366_v50 = vmul.f32 1.442695, %v365_v48  ;;  %v352_v51 = vshra.s32 %v350_v49, 16  ;;  %v351_v56 = vand.u32 65535, %v350_v49 }
 0x4fa   : > { %661 = vpow2.f32 %v366_v50  ;;  %v354_v52 = vcvt.s32.f32 %v352_v51  ;;  %v353_v58 = vcvt.s32.f32 %v351_v56 }
 0x4fc   : > { %355 = vmin.xlane.f32.xlu1 %v354_v52 }
 0x507   : > { %v662_v54 = vpop.eup %661 }
 0x508   : > { %v371_v55 = vadd.f32 %v662_v54, %v344_v53  ;;  %370 = vst.msk [vmem:[%s904_s9] sm:$0xff] %vm368_vm12, %v662_v54 }
 0x585   : > { %v356_v57 = vpop.xlane.xlu1 %355 }
 0x586   : > { %vm357_vm13 = vcmp.eq.f32.partialorder %v354_v52, %v356_v57  ;;  %v362_v60 = vcvt.f32.s32 %v356_v57 }
 0x587   : > { %v358_v59 = vsel %vm357_vm13, %v353_v58, inf }
 0x588   : > { %359 = vmin.xlane.f32.xlu0 %v358_v59  ;;  %v363_v62 = vshll.u32 %v362_v60, 16 }
 0x611   : > { %v360_v61 = vpop.xlane.xlu0 %359 }
 0x612   : > { %v361_v63 = vcvt.f32.s32 %v360_v61 }
 0x614   : > { %v364_v0 = vadd.s32 %v363_v62, %v361_v63 }
 0x616   : > { %369 = vst.msk [vmem:[%s910_s11] sm:$0xff] %vm368_vm12, %v364_v0  ;;  %vm372_vm14 = vcmp.eq.s32.totalorder %v890_v7, %v364_v0 }
 0x617   : > { %v373_v1 = vsel %vm372_vm14, -inf, %v346_v46 }
 0x618   : > { %374 = vmax.xlane.f32.xlu1 %v373_v1 }
 0x6a1   : > { %v375_v2 = vpop.xlane.xlu1 %374 }
 0x6a2   : > { %vm376_vm15 = vcmp.ge.f32.partialorder %v373_v1, %v375_v2  ;;  %v392_v3 = vsub.f32 %v375_v2, %v893_v13 }
 0x6a3   : > { %v377_v4 = vsel %vm376_vm15, %v890_v7, 128 }
 0x6a4   : > { %v393_v5 = vmul.f32 1.442695, %v392_v3  ;;  %v379_v6 = vshra.s32 %v377_v4, 16  ;;  %v378_v11 = vand.u32 65535, %v377_v4 }
 0x6a6   : > { %663 = vpow2.f32 %v393_v5  ;;  %v381_v8 = vcvt.s32.f32 %v379_v6  ;;  %v380_v14 = vcvt.s32.f32 %v378_v11 }
 0x6a8   : > { %382 = vmin.xlane.f32.xlu0 %v381_v8 }
 0x6b3   : > { %v664_v9 = vpop.eup %663 }
 0x6b4   : > { %v398_v10 = vadd.f32 %v664_v9, %v371_v55  ;;  %397 = vst.msk [vmem:[%s904_s9] sm:$0xff] %vm395_vm0, %v664_v9 }
 0x731   : > { %v383_v12 = vpop.xlane.xlu0 %382 }
 0x732   : > { %vm384_vm1 = vcmp.eq.f32.partialorder %v381_v8, %v383_v12  ;;  %v389_v16 = vcvt.f32.s32 %v383_v12 }
 0x733   : > { %v385_v15 = vsel %vm384_vm1, %v380_v14, inf }
 0x734   : > { %386 = vmin.xlane.f32.xlu1 %v385_v15  ;;  %v390_v18 = vshll.u32 %v389_v16, 16 }
 0x7bd   : > { %v387_v17 = vpop.xlane.xlu1 %386 }
 0x7be   : > { %v388_v19 = vcvt.f32.s32 %v387_v17 }
 0x7c0   : > { %v391_v20 = vadd.s32 %v390_v18, %v388_v19 }
 0x7c2   : > { %396 = vst.msk [vmem:[%s910_s11] sm:$0xff] %vm395_vm0, %v391_v20  ;;  %vm399_vm2 = vcmp.eq.s32.totalorder %v890_v7, %v391_v20 }
 0x7c3   : > { %v400_v21 = vsel %vm399_vm2, -inf, %v373_v1 }
 0x7c4   : > { %401 = vmax.xlane.f32.xlu0 %v400_v21 }
 0x84d   : > { %v402_v22 = vpop.xlane.xlu0 %401 }
 0x84e   : > { %vm403_vm3 = vcmp.ge.f32.partialorder %v400_v21, %v402_v22  ;;  %v419_v23 = vsub.f32 %v402_v22, %v893_v13 }
 0x84f   : > { %v404_v24 = vsel %vm403_vm3, %v890_v7, 128 }
 0x850   : > { %v420_v25 = vmul.f32 1.442695, %v419_v23  ;;  %v406_v26 = vshra.s32 %v404_v24, 16  ;;  %v405_v30 = vand.u32 65535, %v404_v24 }
 0x852   : > { %665 = vpow2.f32 %v420_v25  ;;  %v408_v27 = vcvt.s32.f32 %v406_v26  ;;  %v407_v32 = vcvt.s32.f32 %v405_v30 }
 0x854   : > { %409 = vmin.xlane.f32.xlu1 %v408_v27 }
 0x85f   : > { %v666_v28 = vpop.eup %665 }
 0x860   : > { %v425_v29 = vadd.f32 %v666_v28, %v398_v10  ;;  %424 = vst.msk [vmem:[%s904_s9] sm:$0xff] %vm422_vm4, %v666_v28 }
 0x8dd   : > { %v410_v31 = vpop.xlane.xlu1 %409 }
 0x8de   : > { %vm411_vm5 = vcmp.eq.f32.partialorder %v408_v27, %v410_v31  ;;  %v416_v34 = vcvt.f32.s32 %v410_v31 }
 0x8df   : > { %v412_v33 = vsel %vm411_vm5, %v407_v32, inf }
 0x8e0   : > { %413 = vmin.xlane.f32.xlu0 %v412_v33  ;;  %v417_v36 = vshll.u32 %v416_v34, 16 }
 0x969   : > { %v414_v35 = vpop.xlane.xlu0 %413 }
 0x96a   : > { %v415_v37 = vcvt.f32.s32 %v414_v35 }
 0x96c   : > { %v418_v38 = vadd.s32 %v417_v36, %v415_v37 }
 0x96e   : > { %423 = vst.msk [vmem:[%s910_s11] sm:$0xff] %vm422_vm4, %v418_v38  ;;  %vm426_vm6 = vcmp.eq.s32.totalorder %v890_v7, %v418_v38 }
 0x96f   : > { %v427_v39 = vsel %vm426_vm6, -inf, %v400_v21 }
 0x970   : > { %428 = vmax.xlane.f32.xlu1 %v427_v39 }
 0x9f9   : > { %v429_v40 = vpop.xlane.xlu1 %428 }
 0x9fa   : > { %vm430_vm7 = vcmp.ge.f32.partialorder %v427_v39, %v429_v40  ;;  %v446_v41 = vsub.f32 %v429_v40, %v893_v13 }
 0x9fb   : > { %v431_v42 = vsel %vm430_vm7, %v890_v7, 128 }
 0x9fc   : > { %v447_v43 = vmul.f32 1.442695, %v446_v41  ;;  %v433_v44 = vshra.s32 %v431_v42, 16  ;;  %v432_v13 = vand.u32 65535, %v431_v42 }
 0x9fe   : > { %667 = vpow2.f32 %v447_v43  ;;  %v435_v45 = vcvt.s32.f32 %v433_v44  ;;  %v434_v7 = vcvt.s32.f32 %v432_v13 }
 0xa00   : > { %436 = vmin.xlane.f32.xlu0 %v435_v45 }
 0xa0b   : > { %v668_v46 = vpop.eup %667 }
 0xa0c   : > { %v452_v47 = vadd.f32 %v668_v46, %v425_v29  ;;  %451 = vst.msk [vmem:[%s904_s9] sm:$0xff] %vm449_vm8, %v668_v46 }
 0xa0e   : > { %669 = vrcp.f32 %v452_v47 }
 0xa13   : > { %v453_v49 = vld [vmem:[%s904_s9] sm:$0xff] }
 0xa1b   : > { %v670_v48 = vpop.eup %669 }
 0xa1c   : > { %v455_v50 = vmul.f32 %v670_v48, %v453_v49 }
 0xa1e   : > { %457 = vst.msk [vmem:[%s904_s9] sm:$0xff] %vm456_vm9, %v455_v50 }
 0xa89   : > { %v437_v51 = vpop.xlane.xlu0 %436 }
 0xa8a   : > { %vm438_vm10 = vcmp.eq.f32.partialorder %v435_v45, %v437_v51  ;;  %v443_v53 = vcvt.f32.s32 %v437_v51 }
 0xa8b   : > { %v439_v52 = vsel %vm438_vm10, %v434_v7, inf }
 0xa8c   : > { %440 = vmin.xlane.f32.xlu1 %v439_v52  ;;  %v444_v55 = vshll.u32 %v443_v53, 16 }
 0xb15   : > { %v441_v54 = vpop.xlane.xlu1 %440 }
 0xb16   : > { %v442_v56 = vcvt.f32.s32 %v441_v54 }
 0xb18   : > { %v445_v57 = vadd.s32 %v444_v55, %v442_v56 }
 0xb1a   : > { %450 = vst.msk [vmem:[%s910_s11] sm:$0xff] %vm449_vm8, %v445_v57 }
 0xb1b PF: > { %p15_p7 = scmp.ge.s32.totalorder %s835_s22, 4   ;;  %s972_s12 = smov %s755_s13 }
 0xb1c   : > { %s973_s13 = smov %s759_s14  ;;  %s974_s14 = smov %s852_s30 }
 0xb1d   : > { %s975_s15 = smov %s835_s22  ;;  %17 = sbr.rel (!%p15_p7) target bundleno = 4 (0x4), region = 84 }
 0xb22   :  { %491 = vsyncpa [#allocation3], 1 }
 0xb23   :  { %493 = vsyncpa [#allocation3 + $0x1], 1 }
 0xb24   :  { %494 = vsyncpa [#allocation5], 1 }

// kernel: tpu_custom_call.1
= control target key start
LH: loop header
LB: loop body
LE: loop exit
PB: predicated region body
PF: predicated region fallthrough
CT: control target
= control target key end

     0   :  { %9 = vsyncpa [#allocation3], 0  ;;  %s957_s0 = inlined_call_operand.hbm [shape: bf16[16,64], index: 0, kind: input, shape index: {}]   ;;  %s958_s1 = inlined_call_operand.hbm [shape: bf16[64,128], index: 1, kind: input, shape index: {}]   ;;  %s959_s2 = inlined_call_operand.vmem [shape: s32[16,6], index: 2, kind: output, shape index: {0}]   ;;  %s960_s3 = inlined_call_operand.vmem [shape: f32[16,6], index: 3, kind: output, shape index: {1}]  }
   0x1   :  { %11 = vsyncpa [#allocation3 + $0x1], 0 }
   0x2   :  { %12 = vsyncpa [#allocation5], 0  ;;  %s791_s12 = smov 0   ;;  %s793_s13 = smov 0  }
   0x3   :  { %s795_s14 = smov 0   ;;  %s797_s15 = smov 0  }
   0x4 LB: > { %s810_s16 = sadd.s32 4294967295, %s763_s15   ;;  %p38_p0 = scmp.ne.s32.totalorder %s755_s13, %s751_s12  ;;  %s763_s15 = sphi %s797_s15, %s975_s15   ;;  %s759_s14 = sphi %s795_s14, %s974_s14   ;;  %s755_s13 = sphi %s793_s13, %s973_s13   ;;  %s751_s12 = sphi %s791_s12, %s972_s12  }
   0x5   : > { %p961_p1 = scmp.eq.s32.totalorder %s810_s16, 0  ;;  %p565_p2 = scmp.ge.s32.totalorder %s763_s15, 1 }
   0x6   : > { %p122_p3 = scmp.lt.s32.totalorder %s763_s15, 3  ;;  %s765_s19 = smov [#allocation4]  }
   0x7   : > { %p818_p4 = por %p961_p1, %p38_p0  ;;  %s134_s20 = sshll.u32 %s765_s19, 4  ;;  %s135_s20 = int_to_ptr.vmem [resolvable:$true] %s134_s20 }
   0x8   : > { %p822_p5 = pnand %p565_p2, %p122_p3  ;;  %s835_s22 = sadd.s32 1, %s763_s15  }
   0x9   : > { %s964_s17 = scalar_select %p818_p4, 1, 0 }
   0xa   : > { %s965_s18 = scalar_select %p822_p5, 1, 0 }
   0xb   : > { %p605_p6 = pneg %p822_p5  ;;  %s25_s23 = sadd.s32 1, %s759_s14 }
   0xc   : > { %s22_s24 = ssub.s32 %s763_s15, %s835_s22  ;;  %s682_s25 = scalar_lea.vmem %s135_s20, 512 }
   0xd   : > { %p830_p7 = pnand %p605_p6, %p961_p1  ;;  %p683_p9 = scmp.ne.s32.totalorder %s135_s20, %s682_s25 }
   0xe   : > { %p690_p12 = scmp.lt.s32.totalorder %s135_s20, %s135_s20  ;;  %p691_p13 = scmp.lt.s32.totalorder %s682_s25, %s682_s25 }
   0xf   : > { %p673_p8 = pneg %p830_p7 }
  0x10   : > { %p692_p0 = por %p691_p13, %p690_p12 }
  0x11   : > { %p685_p10 = pnand %p683_p9, %p673_p8 }
  0x13   : > { %p686_p11 = pneg %p685_p10 }
  0x15   : > { %p693_p2 = pnand %p692_p0, %p686_p11 }
  0x17   : > { %696 = shalt.err (!%p693_p2)
}
  0x18   : > { %s766_s26 = smov 64   ;;  %s767_s27 = smov 4  }
  0x19   : > { %608 = dma.hbm_to_vmem [thread:$0]  (!%p830_p7), %s958_s1, 512, %s135_s20, [#allocation5], %s766_s26, %s766_s26, %s767_s27  }
  0x1a   : > { %p23_p3 = scmp.eq.s32.totalorder %s22_s24, 0  ;;  %p32_p6 = scmp.ne.s32.totalorder %s759_s14, %s755_s13 }
  0x1b   : > { %p33_p8 = scmp.eq.s32.totalorder %s763_s15, 0  ;;  %p614_p9 = scmp.lt.s32.totalorder %s763_s15, 2 }
  0x1c   : > { %s852_s30 = scalar_select %p23_p3, %s759_s14, %s25_s23  }
  0x1d   : > { %p34_p10 = por %p33_p8, %p32_p6  ;;  %s148_s4 = sand.u32 1, %s759_s14  }
  0x1e   : > { %s568_s5 = sshll.u32 %s148_s4, 2  ;;  %s569_s6 = sshll.u32 %s763_s15, 6 }
  0x1f   : > { %s859_s9 = scalar_lea.hbm %s957_s0, %s569_s6  ;;  %s152_s10 = scalar_lea.vmem [#allocation2], %s568_s5 }
  0x20   : > { %s159_s11 = sshll.u32 %s152_s10, 4  ;;  %p861_p7 = pnand %p614_p9, %p34_p10  ;;  %s160_s11 = int_to_ptr.vmem [resolvable:$true] %s159_s11 }
  0x21   : > { %s149_s19 = scalar_lea.sflag [#allocation3], %s148_s4  ;;  %s697_s20 = scalar_lea.hbm %s859_s9, 64 }
  0x22   : > { %p698_p11 = scmp.ne.s32.totalorder %s859_s9, %s697_s20  ;;  %p699_p12 = pneg %p861_p7 }
  0x23   : > { %s702_s23 = scalar_lea.hbm %s957_s0, 128  ;;  %p703_p2 = scmp.lt.s32.totalorder %s859_s9, %s957_s0 }
  0x24   : > { %p700_p13 = pnand %p699_p12, %p698_p11  ;;  %p704_p3 = scmp.lt.s32.totalorder %s702_s23, %s697_s20 }
  0x26   : > { %p701_p0 = pneg %p700_p13  ;;  %p705_p6 = por %p704_p3, %p703_p2 }
  0x28   : > { %p706_p8 = pnand %p705_p6, %p701_p0 }
  0x2a   : > { %709 = shalt.err (!%p706_p8)
}
  0x2b   : > { %s710_s26 = scalar_lea.vmem %s160_s11, 64  ;;  %s768_s27 = smov [#allocation2]  }
  0x2c   : > { %p711_p9 = scmp.ne.s32.totalorder %s160_s11, %s710_s26  ;;  %s715_s28 = sshll.u32 %s768_s27, 4  ;;  %s716_s28 = int_to_ptr.vmem [resolvable:$false] %s715_s28 }
  0x2d   : > { %s717_s29 = scalar_lea.vmem %s716_s28, 128  ;;  %p718_p11 = scmp.lt.s32.totalorder %s160_s11, %s716_s28 }
  0x2e   : > { %p713_p10 = pnand %p711_p9, %p699_p12  ;;  %p719_p13 = scmp.lt.s32.totalorder %s717_s29, %s710_s26 }
  0x30   : > { %p714_p1 = pneg %p713_p10  ;;  %p720_p4 = por %p719_p13, %p718_p11 }
  0x32   : > { %p721_p5 = pnand %p720_p4, %p714_p1 }
  0x34   : > { %724 = shalt.err (!%p721_p5)
}
  0x35   : > { %612 = dma.hbm_to_vmem [thread:$0]  (!%p861_p7), %s859_s9, 64, %s160_s11, %s149_s19  }
  0x36   : > { %p968_p0 = scmp.ne.s32.totalorder %s965_s18, 0 }
  0x37   : > { %s170_s4 = sand.u32 (!%p968_p0), 1, %s755_s13   ;;  %p969_p12 = scmp.ne.s32.totalorder (!%p968_p0), %s964_s17, 0 }
  0x38   : > { %168 = sbr.rel (%p968_p0) target bundleno = 2843 (0xb1b), region = 28  ;;  %s571_s5 = sshll.u32 (!%p968_p0), %s170_s4, 2 }
  0x39   : > { %s171_s6 = scalar_lea.sflag (!%p968_p0), [#allocation3], %s170_s4  ;;  %s174_s7 = scalar_lea.vmem (!%p968_p0), [#allocation2], %s571_s5 }
  0x3d   : > { %742 = dma.done.wait (%p969_p12), %s171_s6, 64  }
  0x3e   : > { %744 = vsyncadd (%p969_p12), %s171_s6, 4294967232  ;;  %p970_p1 = scmp.eq.s32.totalorder %s810_s16, 0 }
  0x40   : > { %746 = dma.done.wait (%p970_p1), [#allocation5], 512   ;;  %p971_p4 = pmov %p970_p1 }
  0x41   : > { %v769_v0 = vmov 0.0   ;;  %vm770_vm0 = vmmov 0   ;;  %v653_v1 = vld [vmem:[#allocation4 + $0x18] sm:$0xff]   ;;  %v654_v2 = vld [vmem:[#allocation4 + $0x10] sm:$0xff]   ;;  %v655_v3 = vld [vmem:[#allocation4 + $0x8] sm:$0xff]   ;;  %vm246_vm1 = vcmask 523264   ;;  %v290_v6 = vlaneseq }
  0x42   : > { %748 = vsyncadd (%p971_p4), [#allocation5], 4294966784  ;;  %587 = vmatprep.subr.bf16.mxu0 %v769_v0  ;;  %595 = vmatprep.mubr.msk.bf16.mxu0 %vm770_vm0, %v769_v0  ;;  %v656_v4 = vld [vmem:[#allocation4] sm:$0xff]   ;;  %v213_v5 = vld [vmem:[%s174_s7] sm:$0xf]  ;;  %p204_p5 = scmp.lt.s32.totalorder %s810_s16, 1 }
  0x43   : > { %588 = vmatpush3.bf16.msra.mxu0 %v653_v1  ;;  %v890_v7 = vand.u32 127, %v290_v6  ;;  %vm315_vm4 = vcmask 7168   ;;  %vm341_vm8 = vcmask 15368   ;;  %vm368_vm12 = vcmask 23568  }
  0x44   : > { %589 = vmatprep.subr.bf16.mxu0 %v769_v0  ;;  %s977_s16 = smov (!%p204_p5, %s810_s16), 1  ;;  %vm395_vm0 = vcmask 31768  }
  0x45   : > { %vm292_vm2 = vcmp.lt.s32.totalorder %v890_v7, 16  ;;  %s573_s17 = sshll.u32 %s977_s16, 3 }
  0x46   : > { %s904_s9 = scalar_lea.vmem %s960_s3, %s573_s17  ;;  %s910_s11 = scalar_lea.vmem %s959_s2, %s573_s17 }
  0x47   : > { %590 = vmatpush3.bf16.msra.mxu0 %v654_v2 }
  0x48   : > { %591 = vmatprep.subr.bf16.mxu0 %v769_v0 }
  0x4b   : > { %592 = vmatpush3.bf16.msra.mxu0 %v655_v3 }
  0x4c   : > { %593 = vmatprep.subr.bf16.mxu0 %v769_v0 }
  0x4f   : > { %594 = vmatpush3.bf16.msra.mxu0 %v656_v4 }
  0x52   : > { %596 = vmatmul.mubr.msk.bf16.vlgmr.msra.gmra.mxu0 %vm246_vm1, %v213_v5 }
 0x112   : > { %v284_v8 = vpop.f32.mrf.mxu0 }
 0x113   : > { %v293_v9 = vsel %vm292_vm2, %v284_v8, -inf }
 0x114   : > { %294 = vmax.xlane.f32.xlu0 %v293_v9  ;;  %v597_v10 = vpop.f32.mrf.mxu0 }
 0x116   : > { %v287_v11 = vpop.f32.mrf.mxu0 }
 0x118   : > { %v598_v12 = vpop.f32.mrf.mxu0 }
 0x19d   : > { %v893_v13 = vpop.xlane.xlu0 %294 }
 0x19e   : > { %v312_v14 = vsub.f32 %v893_v13, %v893_v13  ;;  %vm296_vm3 = vcmp.ge.f32.partialorder %v293_v9, %v893_v13 }
 0x19f   : > { %v297_v15 = vsel %vm296_vm3, %v890_v7, 128 }
 0x1a0   : > { %v313_v16 = vmul.f32 1.442695, %v312_v14  ;;  %v299_v17 = vshra.s32 %v297_v15, 16  ;;  %v298_v20 = vand.u32 65535, %v297_v15 }
 0x1a2   : > { %657 = vpow2.f32 %v313_v16  ;;  %v301_v18 = vcvt.s32.f32 %v299_v17  ;;  %v300_v22 = vcvt.s32.f32 %v298_v20 }
 0x1a4   : > { %302 = vmin.xlane.f32.xlu0 %v301_v18 }
 0x1af   : > { %v658_v19 = vpop.eup %657 }
 0x1b0   : > { %317 = vst.msk [vmem:[%s904_s9] sm:$0xff] %vm315_vm4, %v658_v19 }
 0x22d   : > { %v303_v21 = vpop.xlane.xlu0 %302 }
 0x22e   : > { %vm304_vm5 = vcmp.eq.f32.partialorder %v301_v18, %v303_v21  ;;  %v309_v24 = vcvt.f32.s32 %v303_v21 }
 0x22f   : > { %v305_v23 = vsel %vm304_vm5, %v300_v22, inf }
 0x230   : > { %306 = vmin.xlane.f32.xlu1 %v305_v23  ;;  %v310_v26 = vshll.u32 %v309_v24, 16 }
 0x2b9   : > { %v307_v25 = vpop.xlane.xlu1 %306 }
 0x2ba   : > { %v308_v27 = vcvt.f32.s32 %v307_v25 }
 0x2bc   : > { %v311_v28 = vadd.s32 %v310_v26, %v308_v27 }
 0x2be   : > { %316 = vst.msk [vmem:[%s910_s11] sm:$0xff] %vm315_vm4, %v311_v28  ;;  %vm318_vm6 = vcmp.eq.s32.totalorder %v890_v7, %v311_v28  ;;  %vm422_vm4 = vcmask 39968  }
 0x2bf   : > { %v319_v29 = vsel %vm318_vm6, -inf, %v293_v9 }
 0x2c0   : > { %320 = vmax.xlane.f32.xlu1 %v319_v29 }
 0x349   : > { %v321_v30 = vpop.xlane.xlu1 %320 }
 0x34a   : > { %vm322_vm7 = vcmp.ge.f32.partialorder %v319_v29, %v321_v30  ;;  %v338_v31 = vsub.f32 %v321_v30, %v893_v13 }
 0x34b   : > { %v323_v32 = vsel %vm322_vm7, %v890_v7, 128 }
 0x34c   : > { %v339_v33 = vmul.f32 1.442695, %v338_v31  ;;  %v325_v34 = vshra.s32 %v323_v32, 16  ;;  %v324_v37 = vand.u32 65535, %v323_v32 }
 0x34e   : > { %659 = vpow2.f32 %v339_v33  ;;  %v327_v35 = vcvt.s32.f32 %v325_v34  ;;  %v326_v39 = vcvt.s32.f32 %v324_v37 }
 0x350   : > { %328 = vmin.xlane.f32.xlu0 %v327_v35 }
 0x35b   : > { %v660_v36 = vpop.eup %659 }
 0x35c   : > { %343 = vst.msk [vmem:[%s904_s9] sm:$0xff] %vm341_vm8, %v660_v36  ;;  %v344_v53 = vadd.f32 %v660_v36, %v658_v19 }
 0x3d9   : > { %v329_v38 = vpop.xlane.xlu0 %328 }
 0x3da   : > { %vm330_vm9 = vcmp.eq.f32.partialorder %v327_v35, %v329_v38  ;;  %v335_v41 = vcvt.f32.s32 %v329_v38 }
 0x3db   : > { %v331_v40 = vsel %vm330_vm9, %v326_v39, inf  ;;  %vm456_vm9 = vcmask 48128  }
 0x3dc   : > { %332 = vmin.xlane.f32.xlu1 %v331_v40  ;;  %v336_v43 = vshll.u32 %v335_v41, 16 }
 0x465   : > { %v333_v42 = vpop.xlane.xlu1 %332 }
 0x466   : > { %v334_v44 = vcvt.f32.s32 %v333_v42 }
 0x468   : > { %v337_v45 = vadd.s32 %v336_v43, %v334_v44 }
 0x46a   : > { %342 = vst.msk [vmem:[%s910_s11] sm:$0xff] %vm341_vm8, %v337_v45  ;;  %vm345_vm10 = vcmp.eq.s32.totalorder %v890_v7, %v337_v45  ;;  %vm449_vm8 = vcmask 48168  }
 0x46b   : > { %v346_v46 = vsel %vm345_vm10, -inf, %v319_v29 }
 0x46c   : > { %347 = vmax.xlane.f32.xlu0 %v346_v46 }
 0x4f5   : > { %v348_v47 = vpop.xlane.xlu0 %347 }
 0x4f6   : > { %vm349_vm11 = vcmp.ge.f32.partialorder %v346_v46, %v348_v47  ;;  %v365_v48 = vsub.f32 %v348_v47, %v893_v13 }
 0x4f7   : > { %v350_v49 = vsel %vm349_vm11, %v890_v7, 128 }
 0x4f8   : > { %v366_v50 = vmul.f32 1.442695, %v365_v48  ;;  %v352_v51 = vshra.s32 %v350_v49, 16  ;;  %v351_v56 = vand.u32 65535, %v350_v49 }
 0x4fa   : > { %661 = vpow2.f32 %v366_v50  ;;  %v354_v52 = vcvt.s32.f32 %v352_v51  ;;  %v353_v58 = vcvt.s32.f32 %v351_v56 }
 0x4fc   : > { %355 = vmin.xlane.f32.xlu1 %v354_v52 }
 0x507   : > { %v662_v54 = vpop.eup %661 }
 0x508   : > { %v371_v55 = vadd.f32 %v662_v54, %v344_v53  ;;  %370 = vst.msk [vmem:[%s904_s9] sm:$0xff] %vm368_vm12, %v662_v54 }
 0x585   : > { %v356_v57 = vpop.xlane.xlu1 %355 }
 0x586   : > { %vm357_vm13 = vcmp.eq.f32.partialorder %v354_v52, %v356_v57  ;;  %v362_v60 = vcvt.f32.s32 %v356_v57 }
 0x587   : > { %v358_v59 = vsel %vm357_vm13, %v353_v58, inf }
 0x588   : > { %359 = vmin.xlane.f32.xlu0 %v358_v59  ;;  %v363_v62 = vshll.u32 %v362_v60, 16 }
 0x611   : > { %v360_v61 = vpop.xlane.xlu0 %359 }
 0x612   : > { %v361_v63 = vcvt.f32.s32 %v360_v61 }
 0x614   : > { %v364_v0 = vadd.s32 %v363_v62, %v361_v63 }
 0x616   : > { %369 = vst.msk [vmem:[%s910_s11] sm:$0xff] %vm368_vm12, %v364_v0  ;;  %vm372_vm14 = vcmp.eq.s32.totalorder %v890_v7, %v364_v0 }
 0x617   : > { %v373_v1 = vsel %vm372_vm14, -inf, %v346_v46 }
 0x618   : > { %374 = vmax.xlane.f32.xlu1 %v373_v1 }
 0x6a1   : > { %v375_v2 = vpop.xlane.xlu1 %374 }
 0x6a2   : > { %vm376_vm15 = vcmp.ge.f32.partialorder %v373_v1, %v375_v2  ;;  %v392_v3 = vsub.f32 %v375_v2, %v893_v13 }
 0x6a3   : > { %v377_v4 = vsel %vm376_vm15, %v890_v7, 128 }
 0x6a4   : > { %v393_v5 = vmul.f32 1.442695, %v392_v3  ;;  %v379_v6 = vshra.s32 %v377_v4, 16  ;;  %v378_v11 = vand.u32 65535, %v377_v4 }
 0x6a6   : > { %663 = vpow2.f32 %v393_v5  ;;  %v381_v8 = vcvt.s32.f32 %v379_v6  ;;  %v380_v14 = vcvt.s32.f32 %v378_v11 }
 0x6a8   : > { %382 = vmin.xlane.f32.xlu0 %v381_v8 }
 0x6b3   : > { %v664_v9 = vpop.eup %663 }
 0x6b4   : > { %v398_v10 = vadd.f32 %v664_v9, %v371_v55  ;;  %397 = vst.msk [vmem:[%s904_s9] sm:$0xff] %vm395_vm0, %v664_v9 }
 0x731   : > { %v383_v12 = vpop.xlane.xlu0 %382 }
 0x732   : > { %vm384_vm1 = vcmp.eq.f32.partialorder %v381_v8, %v383_v12  ;;  %v389_v16 = vcvt.f32.s32 %v383_v12 }
 0x733   : > { %v385_v15 = vsel %vm384_vm1, %v380_v14, inf }
 0x734   : > { %386 = vmin.xlane.f32.xlu1 %v385_v15  ;;  %v390_v18 = vshll.u32 %v389_v16, 16 }
 0x7bd   : > { %v387_v17 = vpop.xlane.xlu1 %386 }
 0x7be   : > { %v388_v19 = vcvt.f32.s32 %v387_v17 }
 0x7c0   : > { %v391_v20 = vadd.s32 %v390_v18, %v388_v19 }
 0x7c2   : > { %396 = vst.msk [vmem:[%s910_s11] sm:$0xff] %vm395_vm0, %v391_v20  ;;  %vm399_vm2 = vcmp.eq.s32.totalorder %v890_v7, %v391_v20 }
 0x7c3   : > { %v400_v21 = vsel %vm399_vm2, -inf, %v373_v1 }
 0x7c4   : > { %401 = vmax.xlane.f32.xlu0 %v400_v21 }
 0x84d   : > { %v402_v22 = vpop.xlane.xlu0 %401 }
 0x84e   : > { %vm403_vm3 = vcmp.ge.f32.partialorder %v400_v21, %v402_v22  ;;  %v419_v23 = vsub.f32 %v402_v22, %v893_v13 }
 0x84f   : > { %v404_v24 = vsel %vm403_vm3, %v890_v7, 128 }
 0x850   : > { %v420_v25 = vmul.f32 1.442695, %v419_v23  ;;  %v406_v26 = vshra.s32 %v404_v24, 16  ;;  %v405_v30 = vand.u32 65535, %v404_v24 }
 0x852   : > { %665 = vpow2.f32 %v420_v25  ;;  %v408_v27 = vcvt.s32.f32 %v406_v26  ;;  %v407_v32 = vcvt.s32.f32 %v405_v30 }
 0x854   : > { %409 = vmin.xlane.f32.xlu1 %v408_v27 }
 0x85f   : > { %v666_v28 = vpop.eup %665 }
 0x860   : > { %v425_v29 = vadd.f32 %v666_v28, %v398_v10  ;;  %424 = vst.msk [vmem:[%s904_s9] sm:$0xff] %vm422_vm4, %v666_v28 }
 0x8dd   : > { %v410_v31 = vpop.xlane.xlu1 %409 }
 0x8de   : > { %vm411_vm5 = vcmp.eq.f32.partialorder %v408_v27, %v410_v31  ;;  %v416_v34 = vcvt.f32.s32 %v410_v31 }
 0x8df   : > { %v412_v33 = vsel %vm411_vm5, %v407_v32, inf }
 0x8e0   : > { %413 = vmin.xlane.f32.xlu0 %v412_v33  ;;  %v417_v36 = vshll.u32 %v416_v34, 16 }
 0x969   : > { %v414_v35 = vpop.xlane.xlu0 %413 }
 0x96a   : > { %v415_v37 = vcvt.f32.s32 %v414_v35 }
 0x96c   : > { %v418_v38 = vadd.s32 %v417_v36, %v415_v37 }
 0x96e   : > { %423 = vst.msk [vmem:[%s910_s11] sm:$0xff] %vm422_vm4, %v418_v38  ;;  %vm426_vm6 = vcmp.eq.s32.totalorder %v890_v7, %v418_v38 }
 0x96f   : > { %v427_v39 = vsel %vm426_vm6, -inf, %v400_v21 }
 0x970   : > { %428 = vmax.xlane.f32.xlu1 %v427_v39 }
 0x9f9   : > { %v429_v40 = vpop.xlane.xlu1 %428 }
 0x9fa   : > { %vm430_vm7 = vcmp.ge.f32.partialorder %v427_v39, %v429_v40  ;;  %v446_v41 = vsub.f32 %v429_v40, %v893_v13 }
 0x9fb   : > { %v431_v42 = vsel %vm430_vm7, %v890_v7, 128 }
 0x9fc   : > { %v447_v43 = vmul.f32 1.442695, %v446_v41  ;;  %v433_v44 = vshra.s32 %v431_v42, 16  ;;  %v432_v13 = vand.u32 65535, %v431_v42 }
 0x9fe   : > { %667 = vpow2.f32 %v447_v43  ;;  %v435_v45 = vcvt.s32.f32 %v433_v44  ;;  %v434_v7 = vcvt.s32.f32 %v432_v13 }
 0xa00   : > { %436 = vmin.xlane.f32.xlu0 %v435_v45 }
 0xa0b   : > { %v668_v46 = vpop.eup %667 }
 0xa0c   : > { %v452_v47 = vadd.f32 %v668_v46, %v425_v29  ;;  %451 = vst.msk [vmem:[%s904_s9] sm:$0xff] %vm449_vm8, %v668_v46 }
 0xa0e   : > { %669 = vrcp.f32 %v452_v47 }
 0xa13   : > { %v453_v49 = vld [vmem:[%s904_s9] sm:$0xff] }
 0xa1b   : > { %v670_v48 = vpop.eup %669 }
 0xa1c   : > { %v455_v50 = vmul.f32 %v670_v48, %v453_v49 }
 0xa1e   : > { %457 = vst.msk [vmem:[%s904_s9] sm:$0xff] %vm456_vm9, %v455_v50 }
 0xa89   : > { %v437_v51 = vpop.xlane.xlu0 %436 }
 0xa8a   : > { %vm438_vm10 = vcmp.eq.f32.partialorder %v435_v45, %v437_v51  ;;  %v443_v53 = vcvt.f32.s32 %v437_v51 }
 0xa8b   : > { %v439_v52 = vsel %vm438_vm10, %v434_v7, inf }
 0xa8c   : > { %440 = vmin.xlane.f32.xlu1 %v439_v52  ;;  %v444_v55 = vshll.u32 %v443_v53, 16 }
 0xb15   : > { %v441_v54 = vpop.xlane.xlu1 %440 }
 0xb16   : > { %v442_v56 = vcvt.f32.s32 %v441_v54 }
 0xb18   : > { %v445_v57 = vadd.s32 %v444_v55, %v442_v56 }
 0xb1a   : > { %450 = vst.msk [vmem:[%s910_s11] sm:$0xff] %vm449_vm8, %v445_v57 }
 0xb1b PF: > { %p15_p7 = scmp.ge.s32.totalorder %s835_s22, 4   ;;  %s972_s12 = smov %s755_s13 }
 0xb1c   : > { %s973_s13 = smov %s759_s14  ;;  %s974_s14 = smov %s852_s30 }
 0xb1d   : > { %s975_s15 = smov %s835_s22  ;;  %17 = sbr.rel (!%p15_p7) target bundleno = 4 (0x4), region = 84 }
 0xb22   :  { %491 = vsyncpa [#allocation3], 1 }
 0xb23   :  { %493 = vsyncpa [#allocation3 + $0x1], 1 }
 0xb24   :  { %494 = vsyncpa [#allocation5], 1 }

</bundles_post_ra>
